<compile_context>
chip_gen: v7x
topology: tpu7x:2x2x1
jax: 0.10.0
libtpu: 0.0.40
codegen_flags: <defaults>
</compile_context>

<pallas_src>
import math
import functools

import jax
import jax.numpy as jnp
from jax import lax
from jax.experimental import pallas as pl


# ------------------------------ Model config -------------------------------

VOCAB = 30                     # prot_bert vocab size
VOCAB_PAD = 32                 # padded so the one-hot contraction dim is 32
HIDDEN = 32
N_LAYERS = 2
N_HEADS = 2
HEAD_DIM = HIDDEN // N_HEADS
INTERMEDIATE = 4 * HIDDEN
MAX_POS = 16
NUM_LABELS = 8

# Row layout of the packed f32 constant table [N_CONST_ROWS, HIDDEN]
C_WORD = 0                               # rows [0, VOCAB_PAD): word embeddings (padded)
C_POS = VOCAB_PAD                        # rows [C_POS, C_POS+MAX_POS): pos + token-type emb
C_EMB_G = C_POS + MAX_POS                # embedding LayerNorm gamma
C_EMB_B = C_EMB_G + 1                    # embedding LayerNorm beta
C_POOL_B = C_EMB_B + 1                   # pooler bias
C_CLS_B = C_POOL_B + 1                   # classifier bias (first NUM_LABELS lanes)
N_CONST_ROWS = C_CLS_B + 1

# Row layout of the packed per-layer f32 vector bundle [N_LAYERS, 8, INTERMEDIATE]
V_BQKV, V_BO, V_LN1G, V_LN1B, V_B1, V_B2, V_LN2G, V_LN2B = range(8)


# ----------------------------- Fused Pallas kernel -------------------------

def _bert_fused_kernel(ids_ref, mask_ref, const_ref, lw_ref, lv_ref, hw_ref,
                       o_ref, *, batch, seq, n_layers, n_heads):
    M = batch * seq
    H = HIDDEN
    Dh = H // n_heads
    scale = 1.0 / math.sqrt(Dh)
    f32, bf16 = jnp.float32, jnp.bfloat16

    def mm(a, w):
        # MXU matmul with f32 accumulation (operands pre-cast by the caller).
        return jnp.dot(a, w, preferred_element_type=f32)

    def ln(v, g, b):
        mu = jnp.mean(v, axis=-1, keepdims=True)
        d = v - mu
        var = jnp.mean(d * d, axis=-1, keepdims=True)
        return d * lax.rsqrt(var + 1e-12) * g + b

    # --- fused embedding lookup: one-hot @ word_emb runs on the MXU (no XLA gather) ---
    tok_ids = ids_ref[:, 0:1]                                        # [M,1] int32
    one_hot = (lax.broadcasted_iota(jnp.int32, (M, VOCAB_PAD), 1)
               == tok_ids).astype(f32)                               # [M,VOCAB_PAD]
    x = mm(one_hot, const_ref[C_WORD:C_WORD + VOCAB_PAD, :])         # [M,H] f32
    pos_tok = const_ref[C_POS:C_POS + seq, :]                        # [S,H] pos + token-type
    x = x + jnp.concatenate([pos_tok] * batch, axis=0)               # tile over batch
    x = ln(x, const_ref[C_EMB_G:C_EMB_G + 1, :], const_ref[C_EMB_B:C_EMB_B + 1, :])

    # --- additive attention bias: key-padding mask + block-diagonal batch mask ([M,M]) ---
    # Finite -1e9 (not -inf) so cross-batch-masked rows never produce NaN.
    key_ok = mask_ref[0:1, :] > 0                                    # [1,M]
    bid_col = ids_ref[:, 1:2]                                        # [M,1] batch id
    bid_row = mask_ref[1:2, :]                                       # [1,M] batch id
    bias = jnp.where((bid_col == bid_row) & key_ok, 0.0, -1e9).astype(f32)

    # Static loop over layers (N_LAYERS is tiny; switch to lax.fori_loop if it grows).
    for l in range(n_layers):
        xb = x.astype(bf16)                                          # one cast per producer
        ctx_heads = []
        for h in range(n_heads):
            # Per-head Q/K/V via static WEIGHT-ref lane slices (free) — no value relayouts.
            q = mm(xb, lw_ref[l, :H, h * Dh:(h + 1) * Dh]) \
                + lv_ref[l, V_BQKV:V_BQKV + 1, h * Dh:(h + 1) * Dh]
            k = mm(xb, lw_ref[l, :H, H + h * Dh:H + (h + 1) * Dh]) \
                + lv_ref[l, V_BQKV:V_BQKV + 1, H + h * Dh:H + (h + 1) * Dh]
            v = mm(xb, lw_ref[l, :H, 2 * H + h * Dh:2 * H + (h + 1) * Dh]) \
                + lv_ref[l, V_BQKV:V_BQKV + 1, 2 * H + h * Dh:2 * H + (h + 1) * Dh]

            # Batch-flattened scores: one [M,Dh]x[Dh,M] dot; block-diag bias keeps batches apart.
            s = lax.dot_general(q.astype(bf16), k.astype(bf16),
                                (((1,), (1,)), ((), ())),
                                preferred_element_type=f32) * scale + bias
            e = jnp.exp(s - jnp.max(s, axis=-1, keepdims=True))
            p = e * pl.reciprocal(jnp.sum(e, axis=-1, keepdims=True))    # exact (EUP idle)
            ctx_heads.append(mm(p.astype(bf16), v.astype(bf16)))         # [M,Dh] f32

        # Head merge via one lane concat, then a single output-projection matmul.
        ctx = jnp.concatenate(ctx_heads, axis=-1).astype(bf16)           # [M,H]
        attn = mm(ctx, lw_ref[l, :H, 3 * H:4 * H]) + lv_ref[l, V_BO:V_BO + 1, :H]
        x = ln(attn + x, lv_ref[l, V_LN1G:V_LN1G + 1, :H], lv_ref[l, V_LN1B:V_LN1B + 1, :H])

        # Feed-forward: matmul+GELU, then matmul + residual + LayerNorm.
        # TODO(synk): HF BERT uses exact (erf) GELU; tanh approximation used for robust lowering.
        hmid = jax.nn.gelu(mm(x.astype(bf16), lw_ref[l, :H, 4 * H:8 * H])
                           + lv_ref[l, V_B1:V_B1 + 1, :4 * H], approximate=True)
        ffn = mm(hmid.astype(bf16), lw_ref[l, :4 * H, 8 * H:9 * H]) \
              + lv_ref[l, V_B2:V_B2 + 1, :H]
        x = ln(ffn + x, lv_ref[l, V_LN2G:V_LN2G + 1, :H], lv_ref[l, V_LN2B:V_LN2B + 1, :H])

    # --- pooler (dense + tanh on [CLS]) fused with the classifier head ---
    # Gather the [CLS] rows (row b*seq per batch) with a one-hot selection matmul:
    # avoids 3-D reshapes / strided value slices entirely.
    sel = (lax.broadcasted_iota(jnp.int32, (batch, M), 1)
           == lax.broadcasted_iota(jnp.int32, (batch, M), 0) * seq).astype(f32)
    cls_tok = mm(sel, x)                                             # [B,H] f32
    pooled = jnp.tanh(mm(cls_tok.astype(bf16), hw_ref[:, :H])
                      + const_ref[C_POOL_B:C_POOL_B + 1, :])
    # Dropout(p=0.1) is identity at inference time.
    o_ref[...] = (mm(pooled.astype(bf16), hw_ref[:, H:H + NUM_LABELS])
                  + const_ref[C_CLS_B:C_CLS_B + 1, :NUM_LABELS])     # [B,NUM_LABELS]


# ------------------------------ Parameters ----------------------------------

def init_params(key):
    """Synthetic deterministic weights, packed into 4 kernel operands.
    Matmul weights are stored [in, out] (x @ W); a real prot_bert checkpoint load
    would need to transpose torch's [out, in] Linear weights before packing."""
    def nrm(k, shape, scale=0.02):
        return (scale * jax.random.normal(k, shape)).astype(jnp.float32)

    keys = iter(jax.random.split(key, 8 + 5 * N_LAYERS))

    word_emb = nrm(next(keys), (VOCAB, HIDDEN))
    pos_emb = nrm(next(keys), (MAX_POS, HIDDEN))
    tok_emb = nrm(next(keys), (2, HIDDEN))
    pooler_w = nrm(next(keys), (HIDDEN, HIDDEN))
    cls_w = nrm(next(keys), (HIDDEN, NUM_LABELS))
    wqkv = jnp.stack([nrm(next(keys), (HIDDEN, 3 * HIDDEN)) for _ in range(N_LAYERS)])
    wo = jnp.stack([nrm(next(keys), (HIDDEN, HIDDEN)) for _ in range(N_LAYERS)])
    w1 = jnp.stack([nrm(next(keys), (HIDDEN, INTERMEDIATE)) for _ in range(N_LAYERS)])
    w2 = jnp.stack([nrm(next(keys), (INTERMEDIATE, HIDDEN)) for _ in range(N_LAYERS)])

    # Packed f32 constant table [N_CONST_ROWS, H]: word emb, pos+token-type emb,
    # embedding-LN gamma/beta, pooler bias, classifier bias.
    const = jnp.zeros((N_CONST_ROWS, HIDDEN), jnp.float32)
    const = const.at[C_WORD:C_WORD + VOCAB, :].set(word_emb)
    const = const.at[C_POS:C_POS + MAX_POS, :].set(pos_emb + tok_emb[0][None, :])
    const = const.at[C_EMB_G, :].set(1.0)      # LN gamma; betas / biases stay zero

    # Packed per-layer bf16 matmul weights [L, 4H, 9H]:
    #   rows 0:H  cols 0:3H   -> wqkv     rows 0:H  cols 3H:4H -> wo
    #   rows 0:H  cols 4H:8H  -> w1       rows 0:4H cols 8H:9H -> w2
    lw = jnp.zeros((N_LAYERS, INTERMEDIATE, 9 * HIDDEN), jnp.float32)
    lw = lw.at[:, :HIDDEN, 0:3 * HIDDEN].set(wqkv)
    lw = lw.at[:, :HIDDEN, 3 * HIDDEN:4 * HIDDEN].set(wo)
    lw = lw.at[:, :HIDDEN, 4 * HIDDEN:8 * HIDDEN].set(w1)
    lw = lw.at[:, :, 8 * HIDDEN:9 * HIDDEN].set(w2)

    # Packed per-layer f32 bias / LayerNorm vectors [L, 8, 4H].
    lv = jnp.zeros((N_LAYERS, 8, INTERMEDIATE), jnp.float32)
    lv = lv.at[:, V_LN1G, :HIDDEN].set(1.0)
    lv = lv.at[:, V_LN2G, :HIDDEN].set(1.0)    # all linear biases / LN betas are zero

    # Pooler + classifier bf16 weights packed along the lane axis [H, H+NUM_LABELS].
    head_w = jnp.concatenate([pooler_w, cls_w], axis=1)

    return {"const": const,
            "layer_w": lw.astype(jnp.bfloat16),
            "layer_v": lv,
            "head_w": head_w.astype(jnp.bfloat16)}


# ------------------------------ Forward pass ---------------------------------

@jax.jit
def protein_bert_classifier_forward(params, input_ids, attention_mask):
    B, S = input_ids.shape
    assert S <= MAX_POS
    M = B * S

    # Tiny int32 glue only (no gather, no float activations in HBM): token ids + batch ids
    # as a [M,2] column operand and attention mask + batch ids as a [2,M] row operand.
    bid = jnp.broadcast_to(jnp.arange(B, dtype=jnp.int32)[:, None], (B, S)).reshape(M)
    ids_aux = jnp.stack([input_ids.reshape(M).astype(jnp.int32), bid], axis=1)   # [M,2]
    mask_aux = jnp.stack([attention_mask.reshape(M).astype(jnp.int32), bid], axis=0)  # [2,M]

    kernel = functools.partial(_bert_fused_kernel, batch=B, seq=S,
                               n_layers=N_LAYERS, n_heads=N_HEADS)

    # Gridless call: 6 whole-array VMEM operands; the only HBM write is the logits.
    return pl.pallas_call(
        kernel,
        out_shape=jax.ShapeDtypeStruct((B, NUM_LABELS), jnp.float32),
    )(ids_aux, mask_aux, params["const"], params["layer_w"], params["layer_v"],
      params["head_w"])


# ---------------------------------- Main --------------------------------------

if __name__ == "__main__":
    B, S = 2, 8
    key = jax.random.PRNGKey(0)
    k_param, k_ids = jax.random.split(key)

    params = init_params(k_param)

    input_ids = jax.random.randint(k_ids, (B, S), 0, VOCAB, dtype=jnp.int32)
    # Second sequence has 3 trailing padding positions.
    attention_mask = jnp.array(
        [[1, 1, 1, 1, 1, 1, 1, 1],
         [1, 1, 1, 1, 1, 0, 0, 0]], dtype=jnp.int32)

    logits = jax.block_until_ready(
        protein_bert_classifier_forward(params, input_ids, attention_mask))

    assert logits.shape == (B, NUM_LABELS)
    assert bool(jnp.all(jnp.isfinite(logits)))
    print("KERNEL_OK")
</pallas_src>

<mosaic_0001>
module attributes {stable_mosaic.version = 11 : i64} {
  func.func @_bert_fused_kernel(%arg0: memref<16x2xi32, #tpu.memory_space<vmem>>, %arg1: memref<2x16xi32, #tpu.memory_space<vmem>>, %arg2: memref<52x32xf32, #tpu.memory_space<vmem>>, %arg3: memref<2x128x288xbf16, #tpu.memory_space<vmem>>, %arg4: memref<2x8x128xf32, #tpu.memory_space<vmem>>, %arg5: memref<32x40xbf16, #tpu.memory_space<vmem>>, %arg6: memref<2x8xf32, #tpu.memory_space<vmem>>) attributes {dimension_semantics = [], scalar_prefetch = 0 : i64, scratch_operands = 0 : i64, tpu.core_type = #tpu.core_type<tc>} {
    %c0 = arith.constant 0 : index
    %c0_0 = arith.constant 0 : index
    %0 = vector.load %arg0[%c0, %c0_0] : memref<16x2xi32, #tpu.memory_space<vmem>>, vector<16x1xi32>
    %1 = tpu.iota {dimensions = array<i32: 1>} : vector<16x32xi32>
    %2 = vector.broadcast %0 : vector<16x1xi32> to vector<16x32xi32>
    %3 = arith.cmpi eq, %1, %2 : vector<16x32xi32>
    %4 = arith.extui %3 : vector<16x32xi1> to vector<16x32xi32>
    %5 = arith.sitofp %4 : vector<16x32xi32> to vector<16x32xf32>
    %c0_1 = arith.constant 0 : index
    %c0_2 = arith.constant 0 : index
    %6 = vector.load %arg2[%c0_1, %c0_2] : memref<52x32xf32, #tpu.memory_space<vmem>>, vector<32x32xf32>
    %cst = arith.constant dense<0.000000e+00> : vector<16x32xf32>
    %7 = tpu.matmul %5, %6, %cst {dimension_numbers = #tpu.dot_dimension_numbers<[1], [0], [0], [1], [0, 0, 1, 1], [], []>} : vector<16x32xf32>, vector<32x32xf32>, vector<16x32xf32> -> vector<16x32xf32>
    %c32 = arith.constant 32 : index
    %c0_3 = arith.constant 0 : index
    %8 = vector.load %arg2[%c32, %c0_3] : memref<52x32xf32, #tpu.memory_space<vmem>>, vector<8x32xf32>
    %9 = tpu.concatenate %8, %8 in 0 : vector<8x32xf32>, vector<8x32xf32> -> vector<16x32xf32>
    %10 = arith.addf %7, %9 : vector<16x32xf32>
    %c48 = arith.constant 48 : index
    %c0_4 = arith.constant 0 : index
    %11 = vector.load %arg2[%c48, %c0_4] : memref<52x32xf32, #tpu.memory_space<vmem>>, vector<1x32xf32>
    %c49 = arith.constant 49 : index
    %c0_5 = arith.constant 0 : index
    %12 = vector.load %arg2[%c49, %c0_5] : memref<52x32xf32, #tpu.memory_space<vmem>>, vector<1x32xf32>
    %cst_6 = arith.constant dense<0.000000e+00> : vector<16xf32>
    %13 = vector.multi_reduction <add>, %10, %cst_6 [1] : vector<16x32xf32> to vector<16xf32>
    %14 = vector.shape_cast %13 : vector<16xf32> to vector<16x1xf32>
    %cst_7 = arith.constant 3.200000e+01 : f32
    %15 = vector.broadcast %cst_7 : f32 to vector<16x1xf32>
    %16 = arith.divf %14, %15 : vector<16x1xf32>
    %17 = vector.broadcast %16 : vector<16x1xf32> to vector<16x32xf32>
    %18 = arith.subf %10, %17 : vector<16x32xf32>
    %19 = arith.mulf %18, %18 : vector<16x32xf32>
    %cst_8 = arith.constant dense<0.000000e+00> : vector<16xf32>
    %20 = vector.multi_reduction <add>, %19, %cst_8 [1] : vector<16x32xf32> to vector<16xf32>
    %21 = vector.shape_cast %20 : vector<16xf32> to vector<16x1xf32>
    %cst_9 = arith.constant 3.200000e+01 : f32
    %22 = vector.broadcast %cst_9 : f32 to vector<16x1xf32>
    %23 = arith.divf %21, %22 : vector<16x1xf32>
    %cst_10 = arith.constant 9.99999996E-13 : f32
    %24 = vector.broadcast %cst_10 : f32 to vector<16x1xf32>
    %25 = arith.addf %23, %24 : vector<16x1xf32>
    %26 = math.rsqrt %25 : vector<16x1xf32>
    %27 = vector.broadcast %26 : vector<16x1xf32> to vector<16x32xf32>
    %28 = arith.mulf %18, %27 : vector<16x32xf32>
    %29 = vector.broadcast %11 : vector<1x32xf32> to vector<16x32xf32>
    %30 = arith.mulf %28, %29 : vector<16x32xf32>
    %31 = vector.broadcast %12 : vector<1x32xf32> to vector<16x32xf32>
    %32 = arith.addf %30, %31 : vector<16x32xf32>
    %c0_11 = arith.constant 0 : index
    %c0_12 = arith.constant 0 : index
    %33 = vector.load %arg1[%c0_11, %c0_12] : memref<2x16xi32, #tpu.memory_space<vmem>>, vector<1x16xi32>
    %c0_i32 = arith.constant 0 : i32
    %34 = vector.broadcast %c0_i32 : i32 to vector<1x16xi32>
    %35 = arith.cmpi sgt, %33, %34 : vector<1x16xi32>
    %c0_13 = arith.constant 0 : index
    %c1 = arith.constant 1 : index
    %36 = vector.load %arg0[%c0_13, %c1] : memref<16x2xi32, #tpu.memory_space<vmem>>, vector<16x1xi32>
    %c1_14 = arith.constant 1 : index
    %c0_15 = arith.constant 0 : index
    %37 = vector.load %arg1[%c1_14, %c0_15] : memref<2x16xi32, #tpu.memory_space<vmem>>, vector<1x16xi32>
    %38 = vector.broadcast %36 : vector<16x1xi32> to vector<16x16xi32>
    %39 = vector.broadcast %37 : vector<1x16xi32> to vector<16x16xi32>
    %40 = arith.cmpi eq, %38, %39 : vector<16x16xi32>
    %41 = vector.broadcast %35 : vector<1x16xi1> to vector<16x16xi1>
    %42 = arith.andi %40, %41 : vector<16x16xi1>
    %cst_16 = arith.constant 0.000000e+00 : f32
    %cst_17 = arith.constant -1.000000e+09 : f32
    %43 = vector.broadcast %cst_16 : f32 to vector<16x16xf32>
    %44 = vector.broadcast %cst_17 : f32 to vector<16x16xf32>
    %45 = arith.select %42, %43, %44 : vector<16x16xi1>, vector<16x16xf32>
    %46 = arith.truncf %32 : vector<16x32xf32> to vector<16x32xbf16>
    %c0_18 = arith.constant 0 : index
    %c0_19 = arith.constant 0 : index
    %c0_20 = arith.constant 0 : index
    %47 = vector.load %arg3[%c0_18, %c0_19, %c0_20] : memref<2x128x288xbf16, #tpu.memory_space<vmem>>, vector<1x32x16xbf16>
    %48 = vector.shape_cast %47 : vector<1x32x16xbf16> to vector<32x16xbf16>
    %cst_21 = arith.constant dense<0.000000e+00> : vector<16x16xf32>
    %49 = tpu.matmul %46, %48, %cst_21 {dimension_numbers = #tpu.dot_dimension_numbers<[1], [0], [0], [1], [0, 0, 1, 1], [], []>} : vector<16x32xbf16>, vector<32x16xbf16>, vector<16x16xf32> -> vector<16x16xf32>
    %c0_22 = arith.constant 0 : index
    %c0_23 = arith.constant 0 : index
    %c0_24 = arith.constant 0 : index
    %50 = vector.load %arg4[%c0_22, %c0_23, %c0_24] : memref<2x8x128xf32, #tpu.memory_space<vmem>>, vector<1x1x16xf32>
    %51 = vector.shape_cast %50 : vector<1x1x16xf32> to vector<1x16xf32>
    %52 = vector.broadcast %51 : vector<1x16xf32> to vector<16x16xf32>
    %53 = arith.addf %49, %52 : vector<16x16xf32>
    %c0_25 = arith.constant 0 : index
    %c0_26 = arith.constant 0 : index
    %c32_27 = arith.constant 32 : index
    %54 = vector.load %arg3[%c0_25, %c0_26, %c32_27] : memref<2x128x288xbf16, #tpu.memory_space<vmem>>, vector<1x32x16xbf16>
    %55 = vector.shape_cast %54 : vector<1x32x16xbf16> to vector<32x16xbf16>
    %cst_28 = arith.constant dense<0.000000e+00> : vector<16x16xf32>
    %56 = tpu.matmul %46, %55, %cst_28 {dimension_numbers = #tpu.dot_dimension_numbers<[1], [0], [0], [1], [0, 0, 1, 1], [], []>} : vector<16x32xbf16>, vector<32x16xbf16>, vector<16x16xf32> -> vector<16x16xf32>
    %c0_29 = arith.constant 0 : index
    %c0_30 = arith.constant 0 : index
    %c32_31 = arith.constant 32 : index
    %57 = vector.load %arg4[%c0_29, %c0_30, %c32_31] : memref<2x8x128xf32, #tpu.memory_space<vmem>>, vector<1x1x16xf32>
    %58 = vector.shape_cast %57 : vector<1x1x16xf32> to vector<1x16xf32>
    %59 = vector.broadcast %58 : vector<1x16xf32> to vector<16x16xf32>
    %60 = arith.addf %56, %59 : vector<16x16xf32>
    %c0_32 = arith.constant 0 : index
    %c0_33 = arith.constant 0 : index
    %c64 = arith.constant 64 : index
    %61 = vector.load %arg3[%c0_32, %c0_33, %c64] : memref<2x128x288xbf16, #tpu.memory_space<vmem>>, vector<1x32x16xbf16>
    %62 = vector.shape_cast %61 : vector<1x32x16xbf16> to vector<32x16xbf16>
    %cst_34 = arith.constant dense<0.000000e+00> : vector<16x16xf32>
    %63 = tpu.matmul %46, %62, %cst_34 {dimension_numbers = #tpu.dot_dimension_numbers<[1], [0], [0], [1], [0, 0, 1, 1], [], []>} : vector<16x32xbf16>, vector<32x16xbf16>, vector<16x16xf32> -> vector<16x16xf32>
    %c0_35 = arith.constant 0 : index
    %c0_36 = arith.constant 0 : index
    %c64_37 = arith.constant 64 : index
    %64 = vector.load %arg4[%c0_35, %c0_36, %c64_37] : memref<2x8x128xf32, #tpu.memory_space<vmem>>, vector<1x1x16xf32>
    %65 = vector.shape_cast %64 : vector<1x1x16xf32> to vector<1x16xf32>
    %66 = vector.broadcast %65 : vector<1x16xf32> to vector<16x16xf32>
    %67 = arith.addf %63, %66 : vector<16x16xf32>
    %68 = arith.truncf %53 : vector<16x16xf32> to vector<16x16xbf16>
    %69 = arith.truncf %60 : vector<16x16xf32> to vector<16x16xbf16>
    %cst_38 = arith.constant dense<0.000000e+00> : vector<16x16xf32>
    %70 = tpu.matmul %68, %69, %cst_38 {dimension_numbers = #tpu.dot_dimension_numbers<[1], [1], [0], [0], [0, 0, 1, 0], [], []>} : vector<16x16xbf16>, vector<16x16xbf16>, vector<16x16xf32> -> vector<16x16xf32>
    %cst_39 = arith.constant 2.500000e-01 : f32
    %71 = vector.broadcast %cst_39 : f32 to vector<16x16xf32>
    %72 = arith.mulf %70, %71 : vector<16x16xf32>
    %73 = arith.addf %72, %45 : vector<16x16xf32>
    %cst_40 = arith.constant dense<0xFF800000> : vector<16xf32>
    %74 = vector.multi_reduction <maximumf>, %73, %cst_40 [1] : vector<16x16xf32> to vector<16xf32>
    %75 = vector.shape_cast %74 : vector<16xf32> to vector<16x1xf32>
    %76 = vector.broadcast %75 : vector<16x1xf32> to vector<16x16xf32>
    %77 = arith.subf %73, %76 : vector<16x16xf32>
    %78 = math.exp %77 : vector<16x16xf32>
    %cst_41 = arith.constant dense<0.000000e+00> : vector<16xf32>
    %79 = vector.multi_reduction <add>, %78, %cst_41 [1] : vector<16x16xf32> to vector<16xf32>
    %80 = vector.shape_cast %79 : vector<16xf32> to vector<16x1xf32>
    %81 = tpu.reciprocal %80 : vector<16x1xf32> -> vector<16x1xf32>
    %82 = vector.broadcast %81 : vector<16x1xf32> to vector<16x16xf32>
    %83 = arith.mulf %78, %82 : vector<16x16xf32>
    %84 = arith.truncf %83 : vector<16x16xf32> to vector<16x16xbf16>
    %85 = arith.truncf %67 : vector<16x16xf32> to vector<16x16xbf16>
    %cst_42 = arith.constant dense<0.000000e+00> : vector<16x16xf32>
    %86 = tpu.matmul %84, %85, %cst_42 {dimension_numbers = #tpu.dot_dimension_numbers<[1], [0], [0], [1], [0, 0, 1, 1], [], []>} : vector<16x16xbf16>, vector<16x16xbf16>, vector<16x16xf32> -> vector<16x16xf32>
    %c0_43 = arith.constant 0 : index
    %c0_44 = arith.constant 0 : index
    %c16 = arith.constant 16 : index
    %87 = vector.load %arg3[%c0_43, %c0_44, %c16] : memref<2x128x288xbf16, #tpu.memory_space<vmem>>, vector<1x32x16xbf16>
    %88 = vector.shape_cast %87 : vector<1x32x16xbf16> to vector<32x16xbf16>
    %cst_45 = arith.constant dense<0.000000e+00> : vector<16x16xf32>
    %89 = tpu.matmul %46, %88, %cst_45 {dimension_numbers = #tpu.dot_dimension_numbers<[1], [0], [0], [1], [0, 0, 1, 1], [], []>} : vector<16x32xbf16>, vector<32x16xbf16>, vector<16x16xf32> -> vector<16x16xf32>
    %c0_46 = arith.constant 0 : index
    %c0_47 = arith.constant 0 : index
    %c16_48 = arith.constant 16 : index
    %90 = vector.load %arg4[%c0_46, %c0_47, %c16_48] : memref<2x8x128xf32, #tpu.memory_space<vmem>>, vector<1x1x16xf32>
    %91 = vector.shape_cast %90 : vector<1x1x16xf32> to vector<1x16xf32>
    %92 = vector.broadcast %91 : vector<1x16xf32> to vector<16x16xf32>
    %93 = arith.addf %89, %92 : vector<16x16xf32>
    %c0_49 = arith.constant 0 : index
    %c0_50 = arith.constant 0 : index
    %c48_51 = arith.constant 48 : index
    %94 = vector.load %arg3[%c0_49, %c0_50, %c48_51] : memref<2x128x288xbf16, #tpu.memory_space<vmem>>, vector<1x32x16xbf16>
    %95 = vector.shape_cast %94 : vector<1x32x16xbf16> to vector<32x16xbf16>
    %cst_52 = arith.constant dense<0.000000e+00> : vector<16x16xf32>
    %96 = tpu.matmul %46, %95, %cst_52 {dimension_numbers = #tpu.dot_dimension_numbers<[1], [0], [0], [1], [0, 0, 1, 1], [], []>} : vector<16x32xbf16>, vector<32x16xbf16>, vector<16x16xf32> -> vector<16x16xf32>
    %c0_53 = arith.constant 0 : index
    %c0_54 = arith.constant 0 : index
    %c48_55 = arith.constant 48 : index
    %97 = vector.load %arg4[%c0_53, %c0_54, %c48_55] : memref<2x8x128xf32, #tpu.memory_space<vmem>>, vector<1x1x16xf32>
    %98 = vector.shape_cast %97 : vector<1x1x16xf32> to vector<1x16xf32>
    %99 = vector.broadcast %98 : vector<1x16xf32> to vector<16x16xf32>
    %100 = arith.addf %96, %99 : vector<16x16xf32>
    %c0_56 = arith.constant 0 : index
    %c0_57 = arith.constant 0 : index
    %c80 = arith.constant 80 : index
    %101 = vector.load %arg3[%c0_56, %c0_57, %c80] : memref<2x128x288xbf16, #tpu.memory_space<vmem>>, vector<1x32x16xbf16>
    %102 = vector.shape_cast %101 : vector<1x32x16xbf16> to vector<32x16xbf16>
    %cst_58 = arith.constant dense<0.000000e+00> : vector<16x16xf32>
    %103 = tpu.matmul %46, %102, %cst_58 {dimension_numbers = #tpu.dot_dimension_numbers<[1], [0], [0], [1], [0, 0, 1, 1], [], []>} : vector<16x32xbf16>, vector<32x16xbf16>, vector<16x16xf32> -> vector<16x16xf32>
    %c0_59 = arith.constant 0 : index
    %c0_60 = arith.constant 0 : index
    %c80_61 = arith.constant 80 : index
    %104 = vector.load %arg4[%c0_59, %c0_60, %c80_61] : memref<2x8x128xf32, #tpu.memory_space<vmem>>, vector<1x1x16xf32>
    %105 = vector.shape_cast %104 : vector<1x1x16xf32> to vector<1x16xf32>
    %106 = vector.broadcast %105 : vector<1x16xf32> to vector<16x16xf32>
    %107 = arith.addf %103, %106 : vector<16x16xf32>
    %108 = arith.truncf %93 : vector<16x16xf32> to vector<16x16xbf16>
    %109 = arith.truncf %100 : vector<16x16xf32> to vector<16x16xbf16>
    %cst_62 = arith.constant dense<0.000000e+00> : vector<16x16xf32>
    %110 = tpu.matmul %108, %109, %cst_62 {dimension_numbers = #tpu.dot_dimension_numbers<[1], [1], [0], [0], [0, 0, 1, 0], [], []>} : vector<16x16xbf16>, vector<16x16xbf16>, vector<16x16xf32> -> vector<16x16xf32>
    %cst_63 = arith.constant 2.500000e-01 : f32
    %111 = vector.broadcast %cst_63 : f32 to vector<16x16xf32>
    %112 = arith.mulf %110, %111 : vector<16x16xf32>
    %113 = arith.addf %112, %45 : vector<16x16xf32>
    %cst_64 = arith.constant dense<0xFF800000> : vector<16xf32>
    %114 = vector.multi_reduction <maximumf>, %113, %cst_64 [1] : vector<16x16xf32> to vector<16xf32>
    %115 = vector.shape_cast %114 : vector<16xf32> to vector<16x1xf32>
    %116 = vector.broadcast %115 : vector<16x1xf32> to vector<16x16xf32>
    %117 = arith.subf %113, %116 : vector<16x16xf32>
    %118 = math.exp %117 : vector<16x16xf32>
    %cst_65 = arith.constant dense<0.000000e+00> : vector<16xf32>
    %119 = vector.multi_reduction <add>, %118, %cst_65 [1] : vector<16x16xf32> to vector<16xf32>
    %120 = vector.shape_cast %119 : vector<16xf32> to vector<16x1xf32>
    %121 = tpu.reciprocal %120 : vector<16x1xf32> -> vector<16x1xf32>
    %122 = vector.broadcast %121 : vector<16x1xf32> to vector<16x16xf32>
    %123 = arith.mulf %118, %122 : vector<16x16xf32>
    %124 = arith.truncf %123 : vector<16x16xf32> to vector<16x16xbf16>
    %125 = arith.truncf %107 : vector<16x16xf32> to vector<16x16xbf16>
    %cst_66 = arith.constant dense<0.000000e+00> : vector<16x16xf32>
    %126 = tpu.matmul %124, %125, %cst_66 {dimension_numbers = #tpu.dot_dimension_numbers<[1], [0], [0], [1], [0, 0, 1, 1], [], []>} : vector<16x16xbf16>, vector<16x16xbf16>, vector<16x16xf32> -> vector<16x16xf32>
    %127 = tpu.concatenate %86, %126 in 1 : vector<16x16xf32>, vector<16x16xf32> -> vector<16x32xf32>
    %128 = arith.truncf %127 : vector<16x32xf32> to vector<16x32xbf16>
    %c0_67 = arith.constant 0 : index
    %c0_68 = arith.constant 0 : index
    %c96 = arith.constant 96 : index
    %129 = vector.load %arg3[%c0_67, %c0_68, %c96] : memref<2x128x288xbf16, #tpu.memory_space<vmem>>, vector<1x32x32xbf16>
    %130 = vector.shape_cast %129 : vector<1x32x32xbf16> to vector<32x32xbf16>
    %cst_69 = arith.constant dense<0.000000e+00> : vector<16x32xf32>
    %131 = tpu.matmul %128, %130, %cst_69 {dimension_numbers = #tpu.dot_dimension_numbers<[1], [0], [0], [1], [0, 0, 1, 1], [], []>} : vector<16x32xbf16>, vector<32x32xbf16>, vector<16x32xf32> -> vector<16x32xf32>
    %c0_70 = arith.constant 0 : index
    %c1_71 = arith.constant 1 : index
    %c0_72 = arith.constant 0 : index
    %132 = vector.load %arg4[%c0_70, %c1_71, %c0_72] : memref<2x8x128xf32, #tpu.memory_space<vmem>>, vector<1x1x32xf32>
    %133 = vector.shape_cast %132 : vector<1x1x32xf32> to vector<1x32xf32>
    %134 = vector.broadcast %133 : vector<1x32xf32> to vector<16x32xf32>
    %135 = arith.addf %131, %134 : vector<16x32xf32>
    %136 = arith.addf %135, %32 : vector<16x32xf32>
    %c0_73 = arith.constant 0 : index
    %c2 = arith.constant 2 : index
    %c0_74 = arith.constant 0 : index
    %137 = vector.load %arg4[%c0_73, %c2, %c0_74] : memref<2x8x128xf32, #tpu.memory_space<vmem>>, vector<1x1x32xf32>
    %138 = vector.shape_cast %137 : vector<1x1x32xf32> to vector<1x32xf32>
    %c0_75 = arith.constant 0 : index
    %c3 = arith.constant 3 : index
    %c0_76 = arith.constant 0 : index
    %139 = vector.load %arg4[%c0_75, %c3, %c0_76] : memref<2x8x128xf32, #tpu.memory_space<vmem>>, vector<1x1x32xf32>
    %140 = vector.shape_cast %139 : vector<1x1x32xf32> to vector<1x32xf32>
    %cst_77 = arith.constant dense<0.000000e+00> : vector<16xf32>
    %141 = vector.multi_reduction <add>, %136, %cst_77 [1] : vector<16x32xf32> to vector<16xf32>
    %142 = vector.shape_cast %141 : vector<16xf32> to vector<16x1xf32>
    %cst_78 = arith.constant 3.200000e+01 : f32
    %143 = vector.broadcast %cst_78 : f32 to vector<16x1xf32>
    %144 = arith.divf %142, %143 : vector<16x1xf32>
    %145 = vector.broadcast %144 : vector<16x1xf32> to vector<16x32xf32>
    %146 = arith.subf %136, %145 : vector<16x32xf32>
    %147 = arith.mulf %146, %146 : vector<16x32xf32>
    %cst_79 = arith.constant dense<0.000000e+00> : vector<16xf32>
    %148 = vector.multi_reduction <add>, %147, %cst_79 [1] : vector<16x32xf32> to vector<16xf32>
    %149 = vector.shape_cast %148 : vector<16xf32> to vector<16x1xf32>
    %cst_80 = arith.constant 3.200000e+01 : f32
    %150 = vector.broadcast %cst_80 : f32 to vector<16x1xf32>
    %151 = arith.divf %149, %150 : vector<16x1xf32>
    %cst_81 = arith.constant 9.99999996E-13 : f32
    %152 = vector.broadcast %cst_81 : f32 to vector<16x1xf32>
    %153 = arith.addf %151, %152 : vector<16x1xf32>
    %154 = math.rsqrt %153 : vector<16x1xf32>
    %155 = vector.broadcast %154 : vector<16x1xf32> to vector<16x32xf32>
    %156 = arith.mulf %146, %155 : vector<16x32xf32>
    %157 = vector.broadcast %138 : vector<1x32xf32> to vector<16x32xf32>
    %158 = arith.mulf %156, %157 : vector<16x32xf32>
    %159 = vector.broadcast %140 : vector<1x32xf32> to vector<16x32xf32>
    %160 = arith.addf %158, %159 : vector<16x32xf32>
    %161 = arith.truncf %160 : vector<16x32xf32> to vector<16x32xbf16>
    %c0_82 = arith.constant 0 : index
    %c0_83 = arith.constant 0 : index
    %c128 = arith.constant 128 : index
    %162 = vector.load %arg3[%c0_82, %c0_83, %c128] : memref<2x128x288xbf16, #tpu.memory_space<vmem>>, vector<1x32x128xbf16>
    %163 = vector.shape_cast %162 : vector<1x32x128xbf16> to vector<32x128xbf16>
    %cst_84 = arith.constant dense<0.000000e+00> : vector<16x128xf32>
    %164 = tpu.matmul %161, %163, %cst_84 {dimension_numbers = #tpu.dot_dimension_numbers<[1], [0], [0], [1], [0, 0, 1, 1], [], []>} : vector<16x32xbf16>, vector<32x128xbf16>, vector<16x128xf32> -> vector<16x128xf32>
    %c0_85 = arith.constant 0 : index
    %c4 = arith.constant 4 : index
    %c0_86 = arith.constant 0 : index
    %165 = vector.load %arg4[%c0_85, %c4, %c0_86] : memref<2x8x128xf32, #tpu.memory_space<vmem>>, vector<1x1x128xf32>
    %166 = vector.shape_cast %165 : vector<1x1x128xf32> to vector<1x128xf32>
    %167 = vector.broadcast %166 : vector<1x128xf32> to vector<16x128xf32>
    %168 = arith.addf %164, %167 : vector<16x128xf32>
    %169 = arith.mulf %168, %168 : vector<16x128xf32>
    %170 = arith.mulf %168, %169 : vector<16x128xf32>
    %cst_87 = arith.constant 4.471500e-02 : f32
    %171 = vector.broadcast %cst_87 : f32 to vector<16x128xf32>
    %172 = arith.mulf %171, %170 : vector<16x128xf32>
    %173 = arith.addf %168, %172 : vector<16x128xf32>
    %cst_88 = arith.constant 0.797884583 : f32
    %174 = vector.broadcast %cst_88 : f32 to vector<16x128xf32>
    %175 = arith.mulf %174, %173 : vector<16x128xf32>
    %176 = math.tanh %175 : vector<16x128xf32>
    %cst_89 = arith.constant 1.000000e+00 : f32
    %177 = vector.broadcast %cst_89 : f32 to vector<16x128xf32>
    %178 = arith.addf %177, %176 : vector<16x128xf32>
    %cst_90 = arith.constant 5.000000e-01 : f32
    %179 = vector.broadcast %cst_90 : f32 to vector<16x128xf32>
    %180 = arith.mulf %179, %178 : vector<16x128xf32>
    %181 = arith.mulf %168, %180 : vector<16x128xf32>
    %182 = arith.truncf %181 : vector<16x128xf32> to vector<16x128xbf16>
    %c0_91 = arith.constant 0 : index
    %c0_92 = arith.constant 0 : index
    %c256 = arith.constant 256 : index
    %183 = vector.load %arg3[%c0_91, %c0_92, %c256] : memref<2x128x288xbf16, #tpu.memory_space<vmem>>, vector<1x128x32xbf16>
    %184 = vector.shape_cast %183 : vector<1x128x32xbf16> to vector<128x32xbf16>
    %cst_93 = arith.constant dense<0.000000e+00> : vector<16x32xf32>
    %185 = tpu.matmul %182, %184, %cst_93 {dimension_numbers = #tpu.dot_dimension_numbers<[1], [0], [0], [1], [0, 0, 1, 1], [], []>} : vector<16x128xbf16>, vector<128x32xbf16>, vector<16x32xf32> -> vector<16x32xf32>
    %c0_94 = arith.constant 0 : index
    %c5 = arith.constant 5 : index
    %c0_95 = arith.constant 0 : index
    %186 = vector.load %arg4[%c0_94, %c5, %c0_95] : memref<2x8x128xf32, #tpu.memory_space<vmem>>, vector<1x1x32xf32>
    %187 = vector.shape_cast %186 : vector<1x1x32xf32> to vector<1x32xf32>
    %188 = vector.broadcast %187 : vector<1x32xf32> to vector<16x32xf32>
    %189 = arith.addf %185, %188 : vector<16x32xf32>
    %190 = arith.addf %189, %160 : vector<16x32xf32>
    %c0_96 = arith.constant 0 : index
    %c6 = arith.constant 6 : index
    %c0_97 = arith.constant 0 : index
    %191 = vector.load %arg4[%c0_96, %c6, %c0_97] : memref<2x8x128xf32, #tpu.memory_space<vmem>>, vector<1x1x32xf32>
    %192 = vector.shape_cast %191 : vector<1x1x32xf32> to vector<1x32xf32>
    %c0_98 = arith.constant 0 : index
    %c7 = arith.constant 7 : index
    %c0_99 = arith.constant 0 : index
    %193 = vector.load %arg4[%c0_98, %c7, %c0_99] : memref<2x8x128xf32, #tpu.memory_space<vmem>>, vector<1x1x32xf32>
    %194 = vector.shape_cast %193 : vector<1x1x32xf32> to vector<1x32xf32>
    %cst_100 = arith.constant dense<0.000000e+00> : vector<16xf32>
    %195 = vector.multi_reduction <add>, %190, %cst_100 [1] : vector<16x32xf32> to vector<16xf32>
    %196 = vector.shape_cast %195 : vector<16xf32> to vector<16x1xf32>
    %cst_101 = arith.constant 3.200000e+01 : f32
    %197 = vector.broadcast %cst_101 : f32 to vector<16x1xf32>
    %198 = arith.divf %196, %197 : vector<16x1xf32>
    %199 = vector.broadcast %198 : vector<16x1xf32> to vector<16x32xf32>
    %200 = arith.subf %190, %199 : vector<16x32xf32>
    %201 = arith.mulf %200, %200 : vector<16x32xf32>
    %cst_102 = arith.constant dense<0.000000e+00> : vector<16xf32>
    %202 = vector.multi_reduction <add>, %201, %cst_102 [1] : vector<16x32xf32> to vector<16xf32>
    %203 = vector.shape_cast %202 : vector<16xf32> to vector<16x1xf32>
    %cst_103 = arith.constant 3.200000e+01 : f32
    %204 = vector.broadcast %cst_103 : f32 to vector<16x1xf32>
    %205 = arith.divf %203, %204 : vector<16x1xf32>
    %cst_104 = arith.constant 9.99999996E-13 : f32
    %206 = vector.broadcast %cst_104 : f32 to vector<16x1xf32>
    %207 = arith.addf %205, %206 : vector<16x1xf32>
    %208 = math.rsqrt %207 : vector<16x1xf32>
    %209 = vector.broadcast %208 : vector<16x1xf32> to vector<16x32xf32>
    %210 = arith.mulf %200, %209 : vector<16x32xf32>
    %211 = vector.broadcast %192 : vector<1x32xf32> to vector<16x32xf32>
    %212 = arith.mulf %210, %211 : vector<16x32xf32>
    %213 = vector.broadcast %194 : vector<1x32xf32> to vector<16x32xf32>
    %214 = arith.addf %212, %213 : vector<16x32xf32>
    %215 = arith.truncf %214 : vector<16x32xf32> to vector<16x32xbf16>
    %c1_105 = arith.constant 1 : index
    %c0_106 = arith.constant 0 : index
    %c0_107 = arith.constant 0 : index
    %216 = vector.load %arg3[%c1_105, %c0_106, %c0_107] : memref<2x128x288xbf16, #tpu.memory_space<vmem>>, vector<1x32x16xbf16>
    %217 = vector.shape_cast %216 : vector<1x32x16xbf16> to vector<32x16xbf16>
    %cst_108 = arith.constant dense<0.000000e+00> : vector<16x16xf32>
    %218 = tpu.matmul %215, %217, %cst_108 {dimension_numbers = #tpu.dot_dimension_numbers<[1], [0], [0], [1], [0, 0, 1, 1], [], []>} : vector<16x32xbf16>, vector<32x16xbf16>, vector<16x16xf32> -> vector<16x16xf32>
    %c1_109 = arith.constant 1 : index
    %c0_110 = arith.constant 0 : index
    %c0_111 = arith.constant 0 : index
    %219 = vector.load %arg4[%c1_109, %c0_110, %c0_111] : memref<2x8x128xf32, #tpu.memory_space<vmem>>, vector<1x1x16xf32>
    %220 = vector.shape_cast %219 : vector<1x1x16xf32> to vector<1x16xf32>
    %221 = vector.broadcast %220 : vector<1x16xf32> to vector<16x16xf32>
    %222 = arith.addf %218, %221 : vector<16x16xf32>
    %c1_112 = arith.constant 1 : index
    %c0_113 = arith.constant 0 : index
    %c32_114 = arith.constant 32 : index
    %223 = vector.load %arg3[%c1_112, %c0_113, %c32_114] : memref<2x128x288xbf16, #tpu.memory_space<vmem>>, vector<1x32x16xbf16>
    %224 = vector.shape_cast %223 : vector<1x32x16xbf16> to vector<32x16xbf16>
    %cst_115 = arith.constant dense<0.000000e+00> : vector<16x16xf32>
    %225 = tpu.matmul %215, %224, %cst_115 {dimension_numbers = #tpu.dot_dimension_numbers<[1], [0], [0], [1], [0, 0, 1, 1], [], []>} : vector<16x32xbf16>, vector<32x16xbf16>, vector<16x16xf32> -> vector<16x16xf32>
    %c1_116 = arith.constant 1 : index
    %c0_117 = arith.constant 0 : index
    %c32_118 = arith.constant 32 : index
    %226 = vector.load %arg4[%c1_116, %c0_117, %c32_118] : memref<2x8x128xf32, #tpu.memory_space<vmem>>, vector<1x1x16xf32>
    %227 = vector.shape_cast %226 : vector<1x1x16xf32> to vector<1x16xf32>
    %228 = vector.broadcast %227 : vector<1x16xf32> to vector<16x16xf32>
    %229 = arith.addf %225, %228 : vector<16x16xf32>
    %c1_119 = arith.constant 1 : index
    %c0_120 = arith.constant 0 : index
    %c64_121 = arith.constant 64 : index
    %230 = vector.load %arg3[%c1_119, %c0_120, %c64_121] : memref<2x128x288xbf16, #tpu.memory_space<vmem>>, vector<1x32x16xbf16>
    %231 = vector.shape_cast %230 : vector<1x32x16xbf16> to vector<32x16xbf16>
    %cst_122 = arith.constant dense<0.000000e+00> : vector<16x16xf32>
    %232 = tpu.matmul %215, %231, %cst_122 {dimension_numbers = #tpu.dot_dimension_numbers<[1], [0], [0], [1], [0, 0, 1, 1], [], []>} : vector<16x32xbf16>, vector<32x16xbf16>, vector<16x16xf32> -> vector<16x16xf32>
    %c1_123 = arith.constant 1 : index
    %c0_124 = arith.constant 0 : index
    %c64_125 = arith.constant 64 : index
    %233 = vector.load %arg4[%c1_123, %c0_124, %c64_125] : memref<2x8x128xf32, #tpu.memory_space<vmem>>, vector<1x1x16xf32>
    %234 = vector.shape_cast %233 : vector<1x1x16xf32> to vector<1x16xf32>
    %235 = vector.broadcast %234 : vector<1x16xf32> to vector<16x16xf32>
    %236 = arith.addf %232, %235 : vector<16x16xf32>
    %237 = arith.truncf %222 : vector<16x16xf32> to vector<16x16xbf16>
    %238 = arith.truncf %229 : vector<16x16xf32> to vector<16x16xbf16>
    %cst_126 = arith.constant dense<0.000000e+00> : vector<16x16xf32>
    %239 = tpu.matmul %237, %238, %cst_126 {dimension_numbers = #tpu.dot_dimension_numbers<[1], [1], [0], [0], [0, 0, 1, 0], [], []>} : vector<16x16xbf16>, vector<16x16xbf16>, vector<16x16xf32> -> vector<16x16xf32>
    %cst_127 = arith.constant 2.500000e-01 : f32
    %240 = vector.broadcast %cst_127 : f32 to vector<16x16xf32>
    %241 = arith.mulf %239, %240 : vector<16x16xf32>
    %242 = arith.addf %241, %45 : vector<16x16xf32>
    %cst_128 = arith.constant dense<0xFF800000> : vector<16xf32>
    %243 = vector.multi_reduction <maximumf>, %242, %cst_128 [1] : vector<16x16xf32> to vector<16xf32>
    %244 = vector.shape_cast %243 : vector<16xf32> to vector<16x1xf32>
    %245 = vector.broadcast %244 : vector<16x1xf32> to vector<16x16xf32>
    %246 = arith.subf %242, %245 : vector<16x16xf32>
    %247 = math.exp %246 : vector<16x16xf32>
    %cst_129 = arith.constant dense<0.000000e+00> : vector<16xf32>
    %248 = vector.multi_reduction <add>, %247, %cst_129 [1] : vector<16x16xf32> to vector<16xf32>
    %249 = vector.shape_cast %248 : vector<16xf32> to vector<16x1xf32>
    %250 = tpu.reciprocal %249 : vector<16x1xf32> -> vector<16x1xf32>
    %251 = vector.broadcast %250 : vector<16x1xf32> to vector<16x16xf32>
    %252 = arith.mulf %247, %251 : vector<16x16xf32>
    %253 = arith.truncf %252 : vector<16x16xf32> to vector<16x16xbf16>
    %254 = arith.truncf %236 : vector<16x16xf32> to vector<16x16xbf16>
    %cst_130 = arith.constant dense<0.000000e+00> : vector<16x16xf32>
    %255 = tpu.matmul %253, %254, %cst_130 {dimension_numbers = #tpu.dot_dimension_numbers<[1], [0], [0], [1], [0, 0, 1, 1], [], []>} : vector<16x16xbf16>, vector<16x16xbf16>, vector<16x16xf32> -> vector<16x16xf32>
    %c1_131 = arith.constant 1 : index
    %c0_132 = arith.constant 0 : index
    %c16_133 = arith.constant 16 : index
    %256 = vector.load %arg3[%c1_131, %c0_132, %c16_133] : memref<2x128x288xbf16, #tpu.memory_space<vmem>>, vector<1x32x16xbf16>
    %257 = vector.shape_cast %256 : vector<1x32x16xbf16> to vector<32x16xbf16>
    %cst_134 = arith.constant dense<0.000000e+00> : vector<16x16xf32>
    %258 = tpu.matmul %215, %257, %cst_134 {dimension_numbers = #tpu.dot_dimension_numbers<[1], [0], [0], [1], [0, 0, 1, 1], [], []>} : vector<16x32xbf16>, vector<32x16xbf16>, vector<16x16xf32> -> vector<16x16xf32>
    %c1_135 = arith.constant 1 : index
    %c0_136 = arith.constant 0 : index
    %c16_137 = arith.constant 16 : index
    %259 = vector.load %arg4[%c1_135, %c0_136, %c16_137] : memref<2x8x128xf32, #tpu.memory_space<vmem>>, vector<1x1x16xf32>
    %260 = vector.shape_cast %259 : vector<1x1x16xf32> to vector<1x16xf32>
    %261 = vector.broadcast %260 : vector<1x16xf32> to vector<16x16xf32>
    %262 = arith.addf %258, %261 : vector<16x16xf32>
    %c1_138 = arith.constant 1 : index
    %c0_139 = arith.constant 0 : index
    %c48_140 = arith.constant 48 : index
    %263 = vector.load %arg3[%c1_138, %c0_139, %c48_140] : memref<2x128x288xbf16, #tpu.memory_space<vmem>>, vector<1x32x16xbf16>
    %264 = vector.shape_cast %263 : vector<1x32x16xbf16> to vector<32x16xbf16>
    %cst_141 = arith.constant dense<0.000000e+00> : vector<16x16xf32>
    %265 = tpu.matmul %215, %264, %cst_141 {dimension_numbers = #tpu.dot_dimension_numbers<[1], [0], [0], [1], [0, 0, 1, 1], [], []>} : vector<16x32xbf16>, vector<32x16xbf16>, vector<16x16xf32> -> vector<16x16xf32>
    %c1_142 = arith.constant 1 : index
    %c0_143 = arith.constant 0 : index
    %c48_144 = arith.constant 48 : index
    %266 = vector.load %arg4[%c1_142, %c0_143, %c48_144] : memref<2x8x128xf32, #tpu.memory_space<vmem>>, vector<1x1x16xf32>
    %267 = vector.shape_cast %266 : vector<1x1x16xf32> to vector<1x16xf32>
    %268 = vector.broadcast %267 : vector<1x16xf32> to vector<16x16xf32>
    %269 = arith.addf %265, %268 : vector<16x16xf32>
    %c1_145 = arith.constant 1 : index
    %c0_146 = arith.constant 0 : index
    %c80_147 = arith.constant 80 : index
    %270 = vector.load %arg3[%c1_145, %c0_146, %c80_147] : memref<2x128x288xbf16, #tpu.memory_space<vmem>>, vector<1x32x16xbf16>
    %271 = vector.shape_cast %270 : vector<1x32x16xbf16> to vector<32x16xbf16>
    %cst_148 = arith.constant dense<0.000000e+00> : vector<16x16xf32>
    %272 = tpu.matmul %215, %271, %cst_148 {dimension_numbers = #tpu.dot_dimension_numbers<[1], [0], [0], [1], [0, 0, 1, 1], [], []>} : vector<16x32xbf16>, vector<32x16xbf16>, vector<16x16xf32> -> vector<16x16xf32>
    %c1_149 = arith.constant 1 : index
    %c0_150 = arith.constant 0 : index
    %c80_151 = arith.constant 80 : index
    %273 = vector.load %arg4[%c1_149, %c0_150, %c80_151] : memref<2x8x128xf32, #tpu.memory_space<vmem>>, vector<1x1x16xf32>
    %274 = vector.shape_cast %273 : vector<1x1x16xf32> to vector<1x16xf32>
    %275 = vector.broadcast %274 : vector<1x16xf32> to vector<16x16xf32>
    %276 = arith.addf %272, %275 : vector<16x16xf32>
    %277 = arith.truncf %262 : vector<16x16xf32> to vector<16x16xbf16>
    %278 = arith.truncf %269 : vector<16x16xf32> to vector<16x16xbf16>
    %cst_152 = arith.constant dense<0.000000e+00> : vector<16x16xf32>
    %279 = tpu.matmul %277, %278, %cst_152 {dimension_numbers = #tpu.dot_dimension_numbers<[1], [1], [0], [0], [0, 0, 1, 0], [], []>} : vector<16x16xbf16>, vector<16x16xbf16>, vector<16x16xf32> -> vector<16x16xf32>
    %cst_153 = arith.constant 2.500000e-01 : f32
    %280 = vector.broadcast %cst_153 : f32 to vector<16x16xf32>
    %281 = arith.mulf %279, %280 : vector<16x16xf32>
    %282 = arith.addf %281, %45 : vector<16x16xf32>
    %cst_154 = arith.constant dense<0xFF800000> : vector<16xf32>
    %283 = vector.multi_reduction <maximumf>, %282, %cst_154 [1] : vector<16x16xf32> to vector<16xf32>
    %284 = vector.shape_cast %283 : vector<16xf32> to vector<16x1xf32>
    %285 = vector.broadcast %284 : vector<16x1xf32> to vector<16x16xf32>
    %286 = arith.subf %282, %285 : vector<16x16xf32>
    %287 = math.exp %286 : vector<16x16xf32>
    %cst_155 = arith.constant dense<0.000000e+00> : vector<16xf32>
    %288 = vector.multi_reduction <add>, %287, %cst_155 [1] : vector<16x16xf32> to vector<16xf32>
    %289 = vector.shape_cast %288 : vector<16xf32> to vector<16x1xf32>
    %290 = tpu.reciprocal %289 : vector<16x1xf32> -> vector<16x1xf32>
    %291 = vector.broadcast %290 : vector<16x1xf32> to vector<16x16xf32>
    %292 = arith.mulf %287, %291 : vector<16x16xf32>
    %293 = arith.truncf %292 : vector<16x16xf32> to vector<16x16xbf16>
    %294 = arith.truncf %276 : vector<16x16xf32> to vector<16x16xbf16>
    %cst_156 = arith.constant dense<0.000000e+00> : vector<16x16xf32>
    %295 = tpu.matmul %293, %294, %cst_156 {dimension_numbers = #tpu.dot_dimension_numbers<[1], [0], [0], [1], [0, 0, 1, 1], [], []>} : vector<16x16xbf16>, vector<16x16xbf16>, vector<16x16xf32> -> vector<16x16xf32>
    %296 = tpu.concatenate %255, %295 in 1 : vector<16x16xf32>, vector<16x16xf32> -> vector<16x32xf32>
    %297 = arith.truncf %296 : vector<16x32xf32> to vector<16x32xbf16>
    %c1_157 = arith.constant 1 : index
    %c0_158 = arith.constant 0 : index
    %c96_159 = arith.constant 96 : index
    %298 = vector.load %arg3[%c1_157, %c0_158, %c96_159] : memref<2x128x288xbf16, #tpu.memory_space<vmem>>, vector<1x32x32xbf16>
    %299 = vector.shape_cast %298 : vector<1x32x32xbf16> to vector<32x32xbf16>
    %cst_160 = arith.constant dense<0.000000e+00> : vector<16x32xf32>
    %300 = tpu.matmul %297, %299, %cst_160 {dimension_numbers = #tpu.dot_dimension_numbers<[1], [0], [0], [1], [0, 0, 1, 1], [], []>} : vector<16x32xbf16>, vector<32x32xbf16>, vector<16x32xf32> -> vector<16x32xf32>
    %c1_161 = arith.constant 1 : index
    %c1_162 = arith.constant 1 : index
    %c0_163 = arith.constant 0 : index
    %301 = vector.load %arg4[%c1_161, %c1_162, %c0_163] : memref<2x8x128xf32, #tpu.memory_space<vmem>>, vector<1x1x32xf32>
    %302 = vector.shape_cast %301 : vector<1x1x32xf32> to vector<1x32xf32>
    %303 = vector.broadcast %302 : vector<1x32xf32> to vector<16x32xf32>
    %304 = arith.addf %300, %303 : vector<16x32xf32>
    %305 = arith.addf %304, %214 : vector<16x32xf32>
    %c1_164 = arith.constant 1 : index
    %c2_165 = arith.constant 2 : index
    %c0_166 = arith.constant 0 : index
    %306 = vector.load %arg4[%c1_164, %c2_165, %c0_166] : memref<2x8x128xf32, #tpu.memory_space<vmem>>, vector<1x1x32xf32>
    %307 = vector.shape_cast %306 : vector<1x1x32xf32> to vector<1x32xf32>
    %c1_167 = arith.constant 1 : index
    %c3_168 = arith.constant 3 : index
    %c0_169 = arith.constant 0 : index
    %308 = vector.load %arg4[%c1_167, %c3_168, %c0_169] : memref<2x8x128xf32, #tpu.memory_space<vmem>>, vector<1x1x32xf32>
    %309 = vector.shape_cast %308 : vector<1x1x32xf32> to vector<1x32xf32>
    %cst_170 = arith.constant dense<0.000000e+00> : vector<16xf32>
    %310 = vector.multi_reduction <add>, %305, %cst_170 [1] : vector<16x32xf32> to vector<16xf32>
    %311 = vector.shape_cast %310 : vector<16xf32> to vector<16x1xf32>
    %cst_171 = arith.constant 3.200000e+01 : f32
    %312 = vector.broadcast %cst_171 : f32 to vector<16x1xf32>
    %313 = arith.divf %311, %312 : vector<16x1xf32>
    %314 = vector.broadcast %313 : vector<16x1xf32> to vector<16x32xf32>
    %315 = arith.subf %305, %314 : vector<16x32xf32>
    %316 = arith.mulf %315, %315 : vector<16x32xf32>
    %cst_172 = arith.constant dense<0.000000e+00> : vector<16xf32>
    %317 = vector.multi_reduction <add>, %316, %cst_172 [1] : vector<16x32xf32> to vector<16xf32>
    %318 = vector.shape_cast %317 : vector<16xf32> to vector<16x1xf32>
    %cst_173 = arith.constant 3.200000e+01 : f32
    %319 = vector.broadcast %cst_173 : f32 to vector<16x1xf32>
    %320 = arith.divf %318, %319 : vector<16x1xf32>
    %cst_174 = arith.constant 9.99999996E-13 : f32
    %321 = vector.broadcast %cst_174 : f32 to vector<16x1xf32>
    %322 = arith.addf %320, %321 : vector<16x1xf32>
    %323 = math.rsqrt %322 : vector<16x1xf32>
    %324 = vector.broadcast %323 : vector<16x1xf32> to vector<16x32xf32>
    %325 = arith.mulf %315, %324 : vector<16x32xf32>
    %326 = vector.broadcast %307 : vector<1x32xf32> to vector<16x32xf32>
    %327 = arith.mulf %325, %326 : vector<16x32xf32>
    %328 = vector.broadcast %309 : vector<1x32xf32> to vector<16x32xf32>
    %329 = arith.addf %327, %328 : vector<16x32xf32>
    %330 = arith.truncf %329 : vector<16x32xf32> to vector<16x32xbf16>
    %c1_175 = arith.constant 1 : index
    %c0_176 = arith.constant 0 : index
    %c128_177 = arith.constant 128 : index
    %331 = vector.load %arg3[%c1_175, %c0_176, %c128_177] : memref<2x128x288xbf16, #tpu.memory_space<vmem>>, vector<1x32x128xbf16>
    %332 = vector.shape_cast %331 : vector<1x32x128xbf16> to vector<32x128xbf16>
    %cst_178 = arith.constant dense<0.000000e+00> : vector<16x128xf32>
    %333 = tpu.matmul %330, %332, %cst_178 {dimension_numbers = #tpu.dot_dimension_numbers<[1], [0], [0], [1], [0, 0, 1, 1], [], []>} : vector<16x32xbf16>, vector<32x128xbf16>, vector<16x128xf32> -> vector<16x128xf32>
    %c1_179 = arith.constant 1 : index
    %c4_180 = arith.constant 4 : index
    %c0_181 = arith.constant 0 : index
    %334 = vector.load %arg4[%c1_179, %c4_180, %c0_181] : memref<2x8x128xf32, #tpu.memory_space<vmem>>, vector<1x1x128xf32>
    %335 = vector.shape_cast %334 : vector<1x1x128xf32> to vector<1x128xf32>
    %336 = vector.broadcast %335 : vector<1x128xf32> to vector<16x128xf32>
    %337 = arith.addf %333, %336 : vector<16x128xf32>
    %338 = arith.mulf %337, %337 : vector<16x128xf32>
    %339 = arith.mulf %337, %338 : vector<16x128xf32>
    %cst_182 = arith.constant 4.471500e-02 : f32
    %340 = vector.broadcast %cst_182 : f32 to vector<16x128xf32>
    %341 = arith.mulf %340, %339 : vector<16x128xf32>
    %342 = arith.addf %337, %341 : vector<16x128xf32>
    %cst_183 = arith.constant 0.797884583 : f32
    %343 = vector.broadcast %cst_183 : f32 to vector<16x128xf32>
    %344 = arith.mulf %343, %342 : vector<16x128xf32>
    %345 = math.tanh %344 : vector<16x128xf32>
    %cst_184 = arith.constant 1.000000e+00 : f32
    %346 = vector.broadcast %cst_184 : f32 to vector<16x128xf32>
    %347 = arith.addf %346, %345 : vector<16x128xf32>
    %cst_185 = arith.constant 5.000000e-01 : f32
    %348 = vector.broadcast %cst_185 : f32 to vector<16x128xf32>
    %349 = arith.mulf %348, %347 : vector<16x128xf32>
    %350 = arith.mulf %337, %349 : vector<16x128xf32>
    %351 = arith.truncf %350 : vector<16x128xf32> to vector<16x128xbf16>
    %c1_186 = arith.constant 1 : index
    %c0_187 = arith.constant 0 : index
    %c256_188 = arith.constant 256 : index
    %352 = vector.load %arg3[%c1_186, %c0_187, %c256_188] : memref<2x128x288xbf16, #tpu.memory_space<vmem>>, vector<1x128x32xbf16>
    %353 = vector.shape_cast %352 : vector<1x128x32xbf16> to vector<128x32xbf16>
    %cst_189 = arith.constant dense<0.000000e+00> : vector<16x32xf32>
    %354 = tpu.matmul %351, %353, %cst_189 {dimension_numbers = #tpu.dot_dimension_numbers<[1], [0], [0], [1], [0, 0, 1, 1], [], []>} : vector<16x128xbf16>, vector<128x32xbf16>, vector<16x32xf32> -> vector<16x32xf32>
    %c1_190 = arith.constant 1 : index
    %c5_191 = arith.constant 5 : index
    %c0_192 = arith.constant 0 : index
    %355 = vector.load %arg4[%c1_190, %c5_191, %c0_192] : memref<2x8x128xf32, #tpu.memory_space<vmem>>, vector<1x1x32xf32>
    %356 = vector.shape_cast %355 : vector<1x1x32xf32> to vector<1x32xf32>
    %357 = vector.broadcast %356 : vector<1x32xf32> to vector<16x32xf32>
    %358 = arith.addf %354, %357 : vector<16x32xf32>
    %359 = arith.addf %358, %329 : vector<16x32xf32>
    %c1_193 = arith.constant 1 : index
    %c6_194 = arith.constant 6 : index
    %c0_195 = arith.constant 0 : index
    %360 = vector.load %arg4[%c1_193, %c6_194, %c0_195] : memref<2x8x128xf32, #tpu.memory_space<vmem>>, vector<1x1x32xf32>
    %361 = vector.shape_cast %360 : vector<1x1x32xf32> to vector<1x32xf32>
    %c1_196 = arith.constant 1 : index
    %c7_197 = arith.constant 7 : index
    %c0_198 = arith.constant 0 : index
    %362 = vector.load %arg4[%c1_196, %c7_197, %c0_198] : memref<2x8x128xf32, #tpu.memory_space<vmem>>, vector<1x1x32xf32>
    %363 = vector.shape_cast %362 : vector<1x1x32xf32> to vector<1x32xf32>
    %cst_199 = arith.constant dense<0.000000e+00> : vector<16xf32>
    %364 = vector.multi_reduction <add>, %359, %cst_199 [1] : vector<16x32xf32> to vector<16xf32>
    %365 = vector.shape_cast %364 : vector<16xf32> to vector<16x1xf32>
    %cst_200 = arith.constant 3.200000e+01 : f32
    %366 = vector.broadcast %cst_200 : f32 to vector<16x1xf32>
    %367 = arith.divf %365, %366 : vector<16x1xf32>
    %368 = vector.broadcast %367 : vector<16x1xf32> to vector<16x32xf32>
    %369 = arith.subf %359, %368 : vector<16x32xf32>
    %370 = arith.mulf %369, %369 : vector<16x32xf32>
    %cst_201 = arith.constant dense<0.000000e+00> : vector<16xf32>
    %371 = vector.multi_reduction <add>, %370, %cst_201 [1] : vector<16x32xf32> to vector<16xf32>
    %372 = vector.shape_cast %371 : vector<16xf32> to vector<16x1xf32>
    %cst_202 = arith.constant 3.200000e+01 : f32
    %373 = vector.broadcast %cst_202 : f32 to vector<16x1xf32>
    %374 = arith.divf %372, %373 : vector<16x1xf32>
    %cst_203 = arith.constant 9.99999996E-13 : f32
    %375 = vector.broadcast %cst_203 : f32 to vector<16x1xf32>
    %376 = arith.addf %374, %375 : vector<16x1xf32>
    %377 = math.rsqrt %376 : vector<16x1xf32>
    %378 = vector.broadcast %377 : vector<16x1xf32> to vector<16x32xf32>
    %379 = arith.mulf %369, %378 : vector<16x32xf32>
    %380 = vector.broadcast %361 : vector<1x32xf32> to vector<16x32xf32>
    %381 = arith.mulf %379, %380 : vector<16x32xf32>
    %382 = vector.broadcast %363 : vector<1x32xf32> to vector<16x32xf32>
    %383 = arith.addf %381, %382 : vector<16x32xf32>
    %384 = tpu.iota {dimensions = array<i32: 1>} : vector<2x16xi32>
    %385 = tpu.iota {dimensions = array<i32: 0>} : vector<2x16xi32>
    %c8_i32 = arith.constant 8 : i32
    %386 = vector.broadcast %c8_i32 : i32 to vector<2x16xi32>
    %387 = arith.muli %385, %386 : vector<2x16xi32>
    %388 = arith.cmpi eq, %384, %387 : vector<2x16xi32>
    %389 = arith.extui %388 : vector<2x16xi1> to vector<2x16xi32>
    %390 = arith.sitofp %389 : vector<2x16xi32> to vector<2x16xf32>
    %cst_204 = arith.constant dense<0.000000e+00> : vector<2x32xf32>
    %391 = tpu.matmul %390, %383, %cst_204 {dimension_numbers = #tpu.dot_dimension_numbers<[1], [0], [0], [1], [0, 0, 1, 1], [], []>} : vector<2x16xf32>, vector<16x32xf32>, vector<2x32xf32> -> vector<2x32xf32>
    %392 = arith.truncf %391 : vector<2x32xf32> to vector<2x32xbf16>
    %c0_205 = arith.constant 0 : index
    %c0_206 = arith.constant 0 : index
    %393 = vector.load %arg5[%c0_205, %c0_206] : memref<32x40xbf16, #tpu.memory_space<vmem>>, vector<32x32xbf16>
    %cst_207 = arith.constant dense<0.000000e+00> : vector<2x32xf32>
    %394 = tpu.matmul %392, %393, %cst_207 {dimension_numbers = #tpu.dot_dimension_numbers<[1], [0], [0], [1], [0, 0, 1, 1], [], []>} : vector<2x32xbf16>, vector<32x32xbf16>, vector<2x32xf32> -> vector<2x32xf32>
    %c50 = arith.constant 50 : index
    %c0_208 = arith.constant 0 : index
    %395 = vector.load %arg2[%c50, %c0_208] : memref<52x32xf32, #tpu.memory_space<vmem>>, vector<1x32xf32>
    %396 = vector.broadcast %395 : vector<1x32xf32> to vector<2x32xf32>
    %397 = arith.addf %394, %396 : vector<2x32xf32>
    %398 = math.tanh %397 : vector<2x32xf32>
    %399 = arith.truncf %398 : vector<2x32xf32> to vector<2x32xbf16>
    %c0_209 = arith.constant 0 : index
    %c32_210 = arith.constant 32 : index
    %400 = vector.load %arg5[%c0_209, %c32_210] : memref<32x40xbf16, #tpu.memory_space<vmem>>, vector<32x8xbf16>
    %cst_211 = arith.constant dense<0.000000e+00> : vector<2x8xf32>
    %401 = tpu.matmul %399, %400, %cst_211 {dimension_numbers = #tpu.dot_dimension_numbers<[1], [0], [0], [1], [0, 0, 1, 1], [], []>} : vector<2x32xbf16>, vector<32x8xbf16>, vector<2x8xf32> -> vector<2x8xf32>
    %c51 = arith.constant 51 : index
    %c0_212 = arith.constant 0 : index
    %402 = vector.load %arg2[%c51, %c0_212] : memref<52x32xf32, #tpu.memory_space<vmem>>, vector<1x8xf32>
    %403 = vector.broadcast %402 : vector<1x8xf32> to vector<2x8xf32>
    %404 = arith.addf %401, %403 : vector<2x8xf32>
    %c0_213 = arith.constant 0 : index
    %c0_214 = arith.constant 0 : index
    %405 = vector.load %arg6[%c0_213, %c0_214] : memref<2x8xf32, #tpu.memory_space<vmem>>, vector<2x8xf32>
    tpu.vector_store %arg6[%c0_213, %c0_214], %404 {strides = array<i32>} : memref<2x8xf32, #tpu.memory_space<vmem>>, vector<2x8xf32>,
    return
  }
}

</mosaic_0001>

<bundles_post_ra>
// kernel: protein_bert_classifier_forward.1
= control target key start
LH: loop header
LB: loop body
LE: loop exit
PB: predicated region body
PF: predicated region fallthrough
CT: control target
= control target key end

     0   :  { %v27_v1 = vlaneseq  ;;  %v2829_v3 = vmov 0   ;;  %v2830_v14 = vmov 0.0   ;;  %s3433_s0 = inlined_call_operand.vmem [shape: s32[16,2], index: 0, kind: input, shape index: {}]   ;;  %s3434_s1 = inlined_call_operand.vmem [shape: s32[2,16], index: 1, kind: input, shape index: {}]   ;;  %s3435_s2 = inlined_call_operand.vmem [shape: f32[52,32], index: 2, kind: input, shape index: {}]   ;;  %s3436_s3 = inlined_call_operand.vmem [shape: bf16[2,128,288], index: 3, kind: input, shape index: {}]   ;;  %s3437_s4 = inlined_call_operand.vmem [shape: f32[2,8,128], index: 4, kind: input, shape index: {}]   ;;  %s3438_s5 = inlined_call_operand.vmem [shape: bf16[32,40], index: 5, kind: input, shape index: {}]   ;;  %s3439_s6 = inlined_call_operand.hbm [shape: f32[2,8], index: 6, kind: output, shape index: {}]  }
   0x1   :  { %v169_v0 = vld [vmem:[%s3434_s1] sm:$0x1]  ;;  %2704 = vset.pattern.permute.xlu0 %v2829_v3  ;;  %v42_v5 = vld [vmem:[%s3435_s2 + $0x8] sm:$0xff]  ;;  %v43_v6 = vld [vmem:[%s3435_s2 + $0x10] sm:$0xff]  ;;  %2440 = vmatprep.subr.bf16.mxu1 %v2830_v14 }
   0x2   :  { %v2884_v2 = vld [vmem:[%s3433_s0] sm:$0xff]  ;;  %vm170_vm0 = vcmp.gt.s32.totalorder %v169_v0, 0  ;;  %v2895_v7 = vshrl.u32 %v27_v1, 7  ;;  %v2901_v8 = vld [vmem:[%s3433_s0 + $0x8] sm:$0xff]  ;;  %v44_v10 = vld [vmem:[%s3435_s2 + $0x18] sm:$0xff] }
   0x3   :  { %v41_v4 = vld [vmem:[%s3435_s2] sm:$0xff]  ;;  %30 = vperm.xlu0 %2704, %v2884_v2   ;;  %v184_v11 = vsel %vm170_vm0, 1, %v2829_v3  ;;  %v2683_v12 = vpack.c.bf16 %v44_v10, %v43_v6 }
   0x4   :  { %v2679_v9 = vpack.c.bf16 %v42_v5, %v41_v4  ;;  %v187_v13 = vsub.s32 0, %v2895_v7 }
   0x6   :  { %2680 = vmatprep.subr.bf16.mxu0 %v2679_v9  ;;  %v2908_v15 = vrot.slane %v184_v11, %v187_v13 }
   0x7   :  { %2682 = vmatpush3.bf16.msra.mxu0 %v2679_v9  ;;  %33 = vperm.xlu0 %2704, %v2901_v8  }
   0x8   :  { %2684 = vmatprep.subr.bf16.mxu0 %v2683_v12 }
   0xb   :  { %2686 = vmatpush3.bf16.msra.mxu0 %v2683_v12 }
   0xc   :  { %2448 = vmatprep.subr.bf16.mxu0 %v2830_v14 }
   0xd   :  { %11 = vsyncpa [#allocation3], 0  ;;  %v2912_v16 = vand.u32 127, %v27_v1  ;;  %vm46_vm1 = vcmask 261120   ;;  %v45_v21 = vld [vmem:[%s3435_s2 + $0x20] sm:$0xff]  ;;  %s2831_s16 = smov 96  }
   0xe   :  { %v2928_v28 = vld [vmem:[%s3436_s3] ss:$12 sps:$4 sm:$0xff]   ;;  %v2935_v29 = vld [vmem:[%s3436_s3 + $0x18] ss:$12 sps:$4 sm:$0xff]   ;;  %s2832_s17 = smov 64   ;;  %vm2833_vm4 = vmmov 0  }
   0xf   :  { %2441 = vmatpush3.bf16.msra.mxu1 %v2928_v28  ;;  %v2950_v40 = vld [vmem:[%s3437_s4] ss:$0 sm:$0xff]  ;;  %2444 = vmatprep.mubr.msk.bf16.mxu1 %vm2833_vm4, %v2830_v14  ;;  %v2225_v51 = vld [vmem:[%s3435_s2 + $0x30] ss:$0 sm:$0xff]  ;;  %v2226_v56 = vld [vmem:[%s3435_s2 + $0x31] ss:$0 sm:$0xff] }
  0x10   :  { %2442 = vmatprep.subr.bf16.mxu1 %v2830_v14  ;;  %v2834_v63 = vmov 1   ;;  %vm363_vm5 = vcmask 130048   ;;  %vm189_vm6 = vcmp.eq.s32.totalorder %v2908_v15, 1  ;;  %s2837_s26 = smov 112   ;;  %s2838_s27 = smov 48   ;;  %vm2205_vm12 = vcmask 58368  }
  0x11   :  { %2705 = vset.pattern.permute.xlu1 %v2834_v63  ;;  %2716 = vset.pattern.permute.xlu0 %v2834_v63  ;;  %s2839_s28 = smov 32   ;;  %s2840_s29 = smov 16  }
  0x12   :  { %s2842_s14 = smov [#allocation2]  }
  0x13   :  { %2443 = vmatpush3.bf16.msra.mxu1 %v2935_v29  ;;  %s2213_s15 = sshll.u32 %s2842_s14, 4  ;;  %s2214_s15 = int_to_ptr.vmem [resolvable:$true] %s2213_s15 }
  0x14   :  { %2456 = vmatprep.subr.bf16.mxu1 %v2830_v14  ;;  %s2805_s18 = scalar_lea.vmem %s2214_s15, 32  ;;  %p2810_p1 = scmp.lt.s32.totalorder %s2214_s15, %s2214_s15 }
  0x15   :  { %p2806_p0 = scmp.ne.s32.totalorder %s2214_s15, %s2805_s18  ;;  %p2811_p2 = scmp.lt.s32.totalorder %s2805_s18, %s2805_s18 }
  0x17   :  { %p2812_p3 = por %p2811_p2, %p2810_p1 }
  0x19   :  { %p2813_p4 = pnand %p2812_p3, %p2806_p0 }
  0x82   :  { %v31_v17 = vpop.permute.xlu0 %30 }
  0x83   :  { %vm35_vm2 = vcmp.eq.s32.totalorder %v2912_v16, %v31_v17 }
  0x84   :  { %v2221_v18 = vsel %vm35_vm2, 1.0, %v2830_v14 }
  0x85   :  { %2437 = vmatprep.mubr.msk.f32.mxu0 %vm46_vm1, %v2221_v18 }
  0x86   :  { %v34_v19 = vpop.permute.xlu0 %33 }
  0x87   :  { %vm36_vm3 = vcmp.eq.s32.totalorder %v2912_v16, %v34_v19 }
  0x88   :  { %v2222_v20 = vsel %vm36_vm3, 1.0, %v2830_v14 }
  0x89   :  { %2438 = vmatmul.mubr.msk.f32.vlgmr.msra.gmra.mrb[0].mxu0 %vm46_vm1, %v2222_v20 }
  0x8a   :  { %2452 = vmatprep.mubr.msk.bf16.mxu0 %vm2833_vm4, %v2830_v14 }
 0x15c   :  { %v2439_v22 = vpop.f32.mrb[0].mxu0 }
 0x15d   :  { %v119_v23 = vpop.f32.mrb[1].mxu0  ;;  %v125_v25 = vadd.f32 %v2439_v22, %v45_v21 }
 0x15e   :  { %v120_v24 = vadd.f32 %v119_v23, %v45_v21 }
 0x15f   :  { %v133_v27 = vsel %vm46_vm1, %v125_v25, 0.0 }
 0x160   :  { %v130_v26 = vsel %vm46_vm1, %v120_v24, 0.0 }
 0x161   :  { %131 = vadd.xlane.f32.xlu1 %v130_v26  ;;  %v2835_v26 = vmov -1e+09  }
 0x165   :  { %134 = vadd.xlane.f32.xlu1 %v133_v27 }
 0x1ee   :  { %v132_v30 = vpop.xlane.xlu1 %131 }
 0x1ef   :  { %v137_v31 = vmul.f32 0.03125, %v132_v30 }
 0x1f1   :  { %v139_v32 = vsub.f32 %v120_v24, %v137_v31  ;;  %v2227_v24 = vld [vmem:[%s3434_s1 + $0x1] ss:$0 sm:$0xff]  ;;  %s2836_s1 = smov 80  }
 0x1f2   :  { %v135_v33 = vpop.xlane.xlu1 %134 }
 0x1f3   :  { %v138_v34 = vmul.f32 0.03125, %v135_v33  ;;  %v141_v35 = vmul.f32 %v139_v32, %v139_v32 }
 0x1f5   :  { %v140_v36 = vsub.f32 %v125_v25, %v138_v34  ;;  %v143_v37 = vsel %vm46_vm1, %v141_v35, 0.0 }
 0x1f6   :  { %144 = vadd.xlane.f32.xlu0 %v143_v37 }
 0x1f7   :  { %v142_v38 = vmul.f32 %v140_v36, %v140_v36 }
 0x1f9   :  { %v146_v39 = vsel %vm46_vm1, %v142_v38, 0.0 }
 0x1fa   :  { %147 = vadd.xlane.f32.xlu1 %v146_v39 }
 0x20b   :  { %260 = vrot.lane.b32.xlu1 %v2928_v28, %s2831_s16 }
 0x20c   :  { %313 = vrot.lane.b32.xlu0 %v2935_v29, %s2832_s17 }
 0x20f   :  { %262 = vrot.lane.b32.xlu1 %v2935_v29, %s2831_s16 }
 0x213   :  { %267 = vrot.lane.b32.xlu1 %v2950_v40, %s2831_s16 }
 0x217   :  { %311 = vrot.lane.b32.xlu1 %v2928_v28, %s2832_s17 }
 0x21b   :  { %173 = vperm.xlu1 %2705, %v2884_v2  }
 0x21f   :  { %176 = vperm.xlu1 %2705, %v2901_v8  }
 0x283   :  { %v145_v41 = vpop.xlane.xlu0 %144 }
 0x284   :  { %v149_v42 = vmul.f32 0.03125, %v145_v41 }
 0x286   :  { %v151_v43 = vadd.f32 1e-12, %v149_v42 }
 0x287   :  { %v148_v44 = vpop.xlane.xlu1 %147  ;;  %v314_v62 = vpop.permute.xlu0 %313 }
 0x288   :  { %2743 = vrsqrt.f32 %v151_v43  ;;  %v150_v45 = vmul.f32 0.03125, %v148_v44 }
 0x28a   :  { %v152_v46 = vadd.f32 1e-12, %v150_v45 }
 0x28b   :  { %v261_v47 = vpop.permute.xlu1 %260 }
 0x28c   :  { %2745 = vrsqrt.f32 %v152_v46  ;;  %2449 = vmatpush3.bf16.msra.mxu0 %v261_v47 }
 0x28d   :  { %2450 = vmatprep.subr.bf16.mxu0 %v2830_v14 }
 0x28f   :  { %v263_v48 = vpop.permute.xlu1 %262 }
 0x290   :  { %2451 = vmatpush3.bf16.msra.mxu0 %v263_v48 }
 0x291   :  { %2464 = vmatprep.subr.bf16.mxu0 %v2830_v14 }
 0x292   :  { %v2744_v49 = vpop.eup %2743 }
 0x293   :  { %v155_v50 = vmul.f32 %v2744_v49, %v139_v32  ;;  %v268_v55 = vpop.permute.xlu1 %267 }
 0x295   :  { %v161_v53 = vmul.f32 %v2225_v51, %v155_v50 }
 0x296   :  { %v2746_v52 = vpop.eup %2745 }
 0x297   :  { %v156_v54 = vmul.f32 %v2746_v52, %v140_v36  ;;  %v2968_v58 = vadd.f32 %v2226_v56, %v161_v53  ;;  %v312_v61 = vpop.permute.xlu1 %311 }
 0x299   :  { %v162_v57 = vmul.f32 %v2225_v51, %v156_v54 }
 0x29b   :  { %v2970_v59 = vadd.f32 %v2226_v56, %v162_v57  ;;  %v174_v23 = vpop.permute.xlu1 %173 }
 0x29c   :  { %vm182_vm7 = vcmp.eq.s32.totalorder %v174_v23, %v2227_v24 }
 0x29d   :  { %v2974_v60 = vpack.c.bf16 %v2970_v59, %v2968_v58  ;;  %vm190_vm8 = vmand %vm182_vm7, %vm189_vm6 }
 0x29e   :  { %v3003_v27 = vsel %vm190_vm8, 0.0, %v2835_v26 }
 0x29f   :  { %2445 = vmatmul.mubr.msk.bf16.vlgmr.msra.gmra.mrb[0].mxu1 %vm46_vm1, %v2974_v60  ;;  %2453 = vmatmul.mubr.msk.bf16.vlgmr.msra.gmra.mrb[4].mxu0 %vm46_vm1, %v2974_v60  ;;  %v177_v25 = vpop.permute.xlu1 %176 }
 0x2a0   :  { %2457 = vmatpush3.bf16.msra.mxu1 %v312_v61  ;;  %2460 = vmatprep.mubr.msk.bf16.mxu1 %vm2833_vm4, %v2830_v14  ;;  %vm183_vm9 = vcmp.eq.s32.totalorder %v177_v25, %v2227_v24 }
 0x2a1   :  { %2458 = vmatprep.subr.bf16.mxu1 %v2830_v14  ;;  %2466 = vmatprep.mubr.msk.bf16.mxu0 %vm2833_vm4, %v2830_v14  ;;  %vm191_vm10 = vmand %vm183_vm9, %vm189_vm6 }
 0x2a2   :  { %v3006_v37 = vsel %vm191_vm10, 0.0, %v2835_v26 }
 0x2a4   :  { %2459 = vmatpush3.bf16.msra.mxu1 %v314_v62 }
 0x2a5   :  { %2470 = vmatprep.subr.bf16.mxu1 %v2830_v14 }
 0x2a7   :  { %2461 = vmatmul.mubr.msk.bf16.vlgmr.msra.gmra.mrb[4].mxu1 %vm46_vm1, %v2974_v60 }
 0x2a8   :  { %2472 = vmatprep.mubr.msk.bf16.mxu1 %vm2833_vm4, %v2830_v14 }
 0x372   :  { %v253_v0 = vpop.f32.mrb[0].mxu1  ;;  %v304_v1 = vpop.f32.mrb[4].mxu0 }
 0x373   :  { %v2446_v3 = vpop.f32.mrb[1].mxu1  ;;  %v2454_v4 = vpop.f32.mrb[5].mxu0  ;;  %v254_v9 = vadd.f32 %v2950_v40, %v253_v0  ;;  %v305_v10 = vadd.f32 %v304_v1, %v268_v55 }
 0x374   :  { %v256_v5 = vpop.f32.mrb[2].mxu1  ;;  %v307_v6 = vpop.f32.mrb[6].mxu0 }
 0x375   :  { %v257_v11 = vadd.f32 %v2950_v40, %v256_v5  ;;  %v308_v12 = vadd.f32 %v307_v6, %v268_v55  ;;  %v2447_v13 = vpop.f32.mrb[3].mxu1  ;;  %v2455_v17 = vpop.f32.mrb[7].mxu0 }
 0x377   :  { %v361_v18 = vpack.c.bf16 %v257_v11, %v254_v9  ;;  %v362_v19 = vpack.c.bf16 %v308_v12, %v305_v10 }
 0x379   :  { %v368_v2 = vsel %vm363_vm5, %v362_v19, 0 }
 0x37a   :  { %v354_v8 = vpop.f32.mrb[4].mxu1  ;;  %2465 = vmatpush3.bf16.xpose.msra.mxu0 %v368_v2 }
 0x37b   :  { %v2462_v20 = vpop.f32.mrb[5].mxu1  ;;  %2476 = vmatprep.subr.bf16.mxu0 %v2830_v14 }
 0x37c   :  { %v357_v21 = vpop.f32.mrb[6].mxu1 }
 0x37d   :  { %v2463_v22 = vpop.f32.mrb[7].mxu1 }
 0x381   :  { %2467 = vmatmul.mubr.msk.bf16.vlgmr.msra.gmra.mrb[8].mxu0 %vm363_vm5, %v361_v18 }
 0x382   :  { %2480 = vmatprep.mubr.msk.bf16.mxu0 %vm2833_vm4, %v2830_v14 }
 0x454   :  { %v404_v30 = vpop.f32.mrb[8].mxu0 }
 0x455   :  { %v411_v31 = vmul.f32 0.25, %v404_v30  ;;  %v2468_v32 = vpop.f32.mrb[9].mxu0 }
 0x456   :  { %v407_v33 = vpop.f32.mrb[10].mxu0 }
 0x457   :  { %v412_v34 = vmul.f32 0.25, %v407_v33  ;;  %v2469_v35 = vpop.f32.mrb[11].mxu0  ;;  %v413_v36 = vadd.f32 %v411_v31, %v3003_v27 }
 0x459   :  { %v415_v15 = vsel %vm363_vm5, %v413_v36, -inf  ;;  %v414_v38 = vadd.f32 %v412_v34, %v3006_v37 }
 0x45a   :  { %416 = vmax.xlane.f32.xlu1 %v415_v15 }
 0x45b   :  { %v418_v39 = vsel %vm363_vm5, %v414_v38, -inf }
 0x45c   :  { %419 = vmax.xlane.f32.xlu0 %v418_v39 }
 0x46b   :  { %533 = vrot.lane.b32.xlu1 %v2928_v28, %s2836_s1 }
 0x472   :  { %317 = vrot.lane.b32.xlu0 %v2950_v40, %s2832_s17 }
 0x476   :  { %483 = vrot.lane.b32.xlu0 %v2928_v28, %s2837_s26 }
 0x47a   :  { %539 = vrot.lane.b32.xlu0 %v2950_v40, %s2836_s1 }
 0x47e   :  { %583 = vrot.lane.b32.xlu0 %v2928_v28, %s2838_s27 }
 0x4e7   :  { %v417_v41 = vpop.xlane.xlu1 %416 }
 0x4e8   :  { %v421_v42 = vsub.f32 %v413_v36, %v417_v41 }
 0x4e9   :  { %v420_v43 = vpop.xlane.xlu0 %419 }
 0x4ea   :  { %v423_v44 = vmul.f32 1.442695, %v421_v42  ;;  %v422_v45 = vsub.f32 %v414_v38, %v420_v43 }
 0x4eb   :  { %v534_v56 = vpop.permute.xlu1 %533 }
 0x4ec   :  { %2747 = vpow2.f32 %v423_v44  ;;  %v425_v46 = vmul.f32 1.442695, %v422_v45 }
 0x4ed   :  { %v318_v47 = vpop.permute.xlu0 %317 }
 0x4ee   :  { %2749 = vpow2.f32 %v425_v46  ;;  %v355_v48 = vadd.f32 %v354_v8, %v318_v47  ;;  %v358_v49 = vadd.f32 %v357_v21, %v318_v47 }
 0x4f0   :  { %v438_v50 = vpack.c.bf16 %v358_v49, %v355_v48 }
 0x4f1   :  { %v484_v55 = vpop.permute.xlu0 %483 }
 0x4f2   :  { %2471 = vmatpush3.bf16.msra.mxu1 %v438_v50  ;;  %2477 = vmatpush3.bf16.msra.mxu0 %v484_v55 }
 0x4f3   :  { %2484 = vmatprep.subr.bf16.mxu1 %v2830_v14  ;;  %2478 = vmatprep.subr.bf16.mxu0 %v2830_v14 }
 0x4f5   :  { %v540_v63 = vpop.permute.xlu0 %539 }
 0x4f6   :  { %v2748_v51 = vpop.eup %2747 }
 0x4f7   :  { %v427_v52 = vsel %vm363_vm5, %v2748_v51, 0.0 }
 0x4f8   :  { %v2750_v53 = vpop.eup %2749  ;;  %428 = vadd.xlane.f32.xlu1 %v427_v52 }
 0x4f9   :  { %v430_v54 = vsel %vm363_vm5, %v2750_v53, 0.0  ;;  %v584_v3 = vpop.permute.xlu0 %583 }
 0x4fc   :  { %431 = vadd.xlane.f32.xlu1 %v430_v54 }
 0x50d   :  { %535 = vrot.lane.b32.xlu1 %v2935_v29, %s2836_s1 }
 0x511   :  { %485 = vrot.lane.b32.xlu1 %v2935_v29, %s2837_s26 }
 0x515   :  { %489 = vrot.lane.b32.xlu1 %v2950_v40, %s2837_s26 }
 0x519   :  { %585 = vrot.lane.b32.xlu1 %v2935_v29, %s2838_s27 }
 0x585   :  { %v429_v57 = vpop.xlane.xlu1 %428 }
 0x586   :  { %2751 = vrcp.f32 %v429_v57 }
 0x589   :  { %v432_v61 = vpop.xlane.xlu1 %431 }
 0x58a   :  { %2753 = vrcp.f32 %v432_v61 }
 0x58d   :  { %v536_v62 = vpop.permute.xlu1 %535 }
 0x590   :  { %v2752_v1 = vpop.eup %2751 }
 0x591   :  { %v486_v0 = vpop.permute.xlu1 %485  ;;  %v435_v5 = vmul.f32 %v2752_v1, %v2748_v51 }
 0x592   :  { %2479 = vmatpush3.bf16.msra.mxu0 %v486_v0 }
 0x593   :  { %2492 = vmatprep.subr.bf16.mxu0 %v2830_v14 }
 0x594   :  { %v2754_v4 = vpop.eup %2753 }
 0x595   :  { %v436_v6 = vmul.f32 %v2754_v4, %v2750_v53  ;;  %2481 = vmatmul.mubr.msk.bf16.vlgmr.msra.gmra.mrb[12].mxu0 %vm46_vm1, %v2974_v60  ;;  %v490_v9 = vpop.permute.xlu1 %489 }
 0x596   :  { %2493 = vmatpush3.bf16.msra.mxu0 %v584_v3  ;;  %2496 = vmatprep.mubr.msk.bf16.mxu0 %vm2833_vm4, %v2830_v14 }
 0x597   :  { %v437_v10 = vpack.c.bf16 %v436_v6, %v435_v5  ;;  %2494 = vmatprep.subr.bf16.mxu0 %v2830_v14 }
 0x599   :  { %2473 = vmatmul.mubr.msk.bf16.vlgmr.msra.gmra.mrb[8].mxu1 %vm363_vm5, %v437_v10  ;;  %v586_v11 = vpop.permute.xlu1 %585 }
 0x59a   :  { %2485 = vmatpush3.bf16.msra.mxu1 %v534_v56  ;;  %2495 = vmatpush3.bf16.msra.mxu0 %v586_v11 }
 0x59b   :  { %2486 = vmatprep.subr.bf16.mxu1 %v2830_v14  ;;  %2488 = vmatprep.mubr.msk.bf16.mxu1 %vm2833_vm4, %v2830_v14 }
 0x59c   :  { %2506 = vmatprep.subr.bf16.mxu0 %v2830_v14 }
 0x59d   :  { %2497 = vmatmul.mubr.msk.bf16.vlgmr.msra.gmra.mrb[16].mxu0 %vm46_vm1, %v2974_v60 }
 0x59e   :  { %2487 = vmatpush3.bf16.msra.mxu1 %v536_v62  ;;  %2508 = vmatprep.mubr.msk.bf16.mxu0 %vm2833_vm4, %v2830_v14 }
 0x59f   :  { %2500 = vmatprep.subr.bf16.mxu1 %v2830_v14 }
 0x5a1   :  { %2489 = vmatmul.mubr.msk.bf16.vlgmr.msra.gmra.mrb[12].mxu1 %vm46_vm1, %v2974_v60 }
 0x5a2   :  { %2502 = vmatprep.mubr.msk.bf16.mxu1 %vm2833_vm4, %v2830_v14 }
 0x668   :  { %v526_v12 = vpop.f32.mrb[12].mxu0 }
 0x669   :  { %v2482_v13 = vpop.f32.mrb[13].mxu0  ;;  %v527_v18 = vadd.f32 %v526_v12, %v490_v9 }
 0x66a   :  { %v529_v17 = vpop.f32.mrb[14].mxu0 }
 0x66b   :  { %v530_v19 = vadd.f32 %v529_v17, %v490_v9  ;;  %v2483_v2 = vpop.f32.mrb[15].mxu0 }
 0x66c   :  { %v3053_v8 = vpop.f32.mrb[8].mxu1 }
 0x66d   :  { %v633_v20 = vpack.c.bf16 %v530_v19, %v527_v18  ;;  %v2474_v21 = vpop.f32.mrb[9].mxu1 }
 0x66e   :  { %v3055_v22 = vpop.f32.mrb[10].mxu1 }
 0x66f   :  { %v2475_v23 = vpop.f32.mrb[11].mxu1 }
 0x670   :  { %v626_v24 = vpop.f32.mrb[16].mxu0 }
 0x671   :  { %v2498_v25 = vpop.f32.mrb[17].mxu0 }
 0x672   :  { %v629_v26 = vpop.f32.mrb[18].mxu0 }
 0x673   :  { %v2499_v60 = vpop.f32.mrb[19].mxu0 }
 0x674   :  { %v576_v30 = vpop.f32.mrb[12].mxu1 }
 0x675   :  { %v2490_v31 = vpop.f32.mrb[13].mxu1  ;;  %v577_v33 = vadd.f32 %v576_v30, %v540_v63 }
 0x676   :  { %v579_v32 = vpop.f32.mrb[14].mxu1 }
 0x677   :  { %v580_v34 = vadd.f32 %v579_v32, %v540_v63  ;;  %v2491_v35 = vpop.f32.mrb[15].mxu1 }
 0x679   :  { %v634_v36 = vpack.c.bf16 %v580_v34, %v577_v33 }
 0x67b   :  { %v639_v15 = vsel %vm363_vm5, %v634_v36, 0 }
 0x67c   :  { %2501 = vmatpush3.bf16.xpose.msra.mxu1 %v639_v15 }
 0x67d   :  { %2512 = vmatprep.subr.bf16.mxu1 %v2830_v14 }
 0x683   :  { %2503 = vmatmul.mubr.msk.bf16.vlgmr.msra.gmra.mrb[16].mxu1 %vm363_vm5, %v633_v20 }
 0x684   :  { %2516 = vmatprep.mubr.msk.bf16.mxu1 %vm2833_vm4, %v2830_v14 }
 0x756   :  { %v675_v38 = vpop.f32.mrb[16].mxu1 }
 0x757   :  { %v682_v39 = vmul.f32 0.25, %v675_v38  ;;  %v2504_v41 = vpop.f32.mrb[17].mxu1 }
 0x758   :  { %v678_v42 = vpop.f32.mrb[18].mxu1 }
 0x759   :  { %v683_v43 = vmul.f32 0.25, %v678_v42  ;;  %v2505_v44 = vpop.f32.mrb[19].mxu1  ;;  %v684_v45 = vadd.f32 %v682_v39, %v3003_v27 }
 0x75b   :  { %v686_v46 = vsel %vm363_vm5, %v684_v45, -inf  ;;  %v685_v47 = vadd.f32 %v683_v43, %v3006_v37 }
 0x75c   :  { %687 = vmax.xlane.f32.xlu0 %v686_v46  ;;  %v2720_v46 = vld [vmem:[%s3436_s3 + $0x1c] ss:$12 sps:$4 sm:$0xff]  }
 0x75d   :  { %v689_v48 = vsel %vm363_vm5, %v685_v47, -inf }
 0x75e   :  { %690 = vmax.xlane.f32.xlu1 %v689_v48 }
 0x76f   :  { %589 = vrot.lane.b32.xlu1 %v2950_v40, %s2838_s27 }
 0x7e9   :  { %v688_v49 = vpop.xlane.xlu0 %687 }
 0x7ea   :  { %v692_v50 = vsub.f32 %v684_v45, %v688_v49 }
 0x7eb   :  { %v691_v51 = vpop.xlane.xlu1 %690 }
 0x7ec   :  { %v694_v52 = vmul.f32 1.442695, %v692_v50  ;;  %v693_v53 = vsub.f32 %v685_v47, %v691_v51 }
 0x7ee   :  { %2755 = vpow2.f32 %v694_v52  ;;  %v696_v54 = vmul.f32 1.442695, %v693_v53 }
 0x7ef   :  { %v590_v55 = vpop.permute.xlu1 %589 }
 0x7f0   :  { %2757 = vpow2.f32 %v696_v54  ;;  %v627_v56 = vadd.f32 %v626_v24, %v590_v55  ;;  %v630_v57 = vadd.f32 %v629_v26, %v590_v55  ;;  %v2243_v55 = vld [vmem:[%s3437_s4 + $0x2] ss:$0 sm:$0xff] }
 0x7f2   :  { %v709_v61 = vpack.c.bf16 %v630_v57, %v627_v56 }
 0x7f4   :  { %2507 = vmatpush3.bf16.msra.mxu0 %v709_v61 }
 0x7f5   :  { %2520 = vmatprep.subr.bf16.mxu0 %v2830_v14 }
 0x7f8   :  { %v2756_v62 = vpop.eup %2755 }
 0x7f9   :  { %v698_v63 = vsel %vm363_vm5, %v2756_v62, 0.0 }
 0x7fa   :  { %v2758_v0 = vpop.eup %2757  ;;  %699 = vadd.xlane.f32.xlu0 %v698_v63 }
 0x7fb   :  { %v701_v40 = vsel %vm363_vm5, %v2758_v0, 0.0 }
 0x7fe   :  { %702 = vadd.xlane.f32.xlu0 %v701_v40 }
 0x814   :  { %770 = vrot.lane.b32.xlu0 %v2928_v28, %s2839_s28 }
 0x887   :  { %v700_v1 = vpop.xlane.xlu0 %699 }
 0x888   :  { %2759 = vrcp.f32 %v700_v1 }
 0x88b   :  { %v703_v3 = vpop.xlane.xlu0 %702 }
 0x88c   :  { %2761 = vrcp.f32 %v703_v3  ;;  %v2721_v3 = vld [vmem:[%s3436_s3 + $0x8] ss:$12 sps:$4 sm:$0xff]  }
 0x88f   :  { %v771_v11 = vpop.permute.xlu0 %770 }
 0x890   :  { %2513 = vmatpush3.bf16.msra.mxu1 %v771_v11  ;;  %v2727_v11 = vld [vmem:[%s3436_s3 + $0x98] ss:$12 sps:$4 sm:$0xff]  }
 0x891   :  { %2514 = vmatprep.subr.bf16.mxu1 %v2830_v14 }
 0x892   :  { %v2760_v4 = vpop.eup %2759 }
 0x893   :  { %v706_v6 = vmul.f32 %v2760_v4, %v2756_v62  ;;  %v2244_v62 = vld [vmem:[%s3437_s4 + $0x3] ss:$0 sm:$0xff] }
 0x894   :  { %v2722_v4 = vld [vmem:[%s3436_s3 + $0x20] ss:$12 sps:$4 sm:$0xff]  }
 0x896   :  { %v2762_v5 = vpop.eup %2761 }
 0x897   :  { %v707_v9 = vmul.f32 %v2762_v5, %v2758_v0  ;;  %v2723_v5 = vld [vmem:[%s3436_s3 + $0x38] ss:$12 sps:$4 sm:$0xff]  }
 0x899   :  { %v708_v10 = vpack.c.bf16 %v707_v9, %v706_v6  ;;  %v2724_v6 = vld [vmem:[%s3436_s3 + $0x50] ss:$12 sps:$4 sm:$0xff]   ;;  %v2725_v9 = vld [vmem:[%s3436_s3 + $0x68] ss:$12 sps:$4 sm:$0xff]  }
 0x89b   :  { %2509 = vmatmul.mubr.msk.bf16.vlgmr.msra.gmra.mrb[20].mxu0 %vm363_vm5, %v708_v10  ;;  %v2726_v10 = vld [vmem:[%s3436_s3 + $0x80] ss:$12 sps:$4 sm:$0xff]  }
 0x89c   :  { %2524 = vmatprep.mubr.msk.bf16.mxu0 %vm2833_vm4, %v2830_v14 }
 0x96e   :  { %v747_v12 = vpop.f32.mrb[20].mxu0 }
 0x96f   :  { %v2510_v13 = vpop.f32.mrb[21].mxu0 }
 0x970   :  { %v750_v17 = vpop.f32.mrb[22].mxu0  ;;  %v2245_v13 = vld [vmem:[%s3437_s4 + $0x4] ss:$0 sm:$0xff] }
 0x971   :  { %v2706_v18 = vpack.i.bf16 %v750_v17, %v747_v12  ;;  %v2511_v19 = vpop.f32.mrb[23].mxu0  ;;  %v2728_v12 = vld [vmem:[%s3436_s3 + $0xb0] ss:$12 sps:$4 sm:$0xff]  }
 0x973   :  { %2707 = vrot.lane.b32.xlu1 %v2706_v18, %s2840_s29 }
 0x977   :  { %772 = vrot.lane.b32.xlu1 %v2935_v29, %s2839_s28  ;;  %v2241_v29 = vld [vmem:[%s3437_s4 + $0x1] ss:$0 sm:$0xff] }
 0x9e5   :  { %v2708_v2 = vpop.permute.xlu1 %2707 }
 0x9e6   :  { %v2710_v20 = vunpack.i.h.bf16 %v2708_v2  ;;  %v2709_v21 = vunpack.i.l.bf16 %v2708_v2 }
 0x9e8   :  { %v763_v28 = vsel %vm363_vm5, %v3055_v22, %v2710_v20  ;;  %v762_v23 = vsel %vm363_vm5, %v3053_v8, %v2709_v21 }
 0x9e9   :  { %v764_v24 = vpack.c.bf16 %v763_v28, %v762_v23  ;;  %v773_v25 = vpop.permute.xlu1 %772 }
 0x9ea   :  { %2515 = vmatpush3.bf16.msra.mxu1 %v773_v25 }
 0x9eb   :  { %2528 = vmatprep.subr.bf16.mxu1 %v2830_v14 }
 0x9ed   :  { %2517 = vmatmul.mubr.msk.bf16.vlgmr.msra.gmra.mrb[20].mxu1 %vm46_vm1, %v764_v24 }
 0x9ee   :  { %2544 = vmatprep.mubr.msk.bf16.mxu1 %vm2833_vm4, %v2830_v14  ;;  %2529 = vmatpush3.bf16.msra.mxu1 %v2721_v3 }
 0x9ef   :  { %2530 = vmatprep.subr.bf16.mxu1 %v2830_v14 }
 0x9f2   :  { %2531 = vmatpush3.bf16.msra.mxu1 %v2722_v4 }
 0x9f3   :  { %2532 = vmatprep.subr.bf16.mxu1 %v2830_v14 }
 0x9f6   :  { %2533 = vmatpush3.bf16.msra.mxu1 %v2723_v5 }
 0x9f7   :  { %2534 = vmatprep.subr.bf16.mxu1 %v2830_v14 }
 0x9fa   :  { %2535 = vmatpush3.bf16.msra.mxu1 %v2724_v6 }
 0x9fb   :  { %2536 = vmatprep.subr.bf16.mxu1 %v2830_v14 }
 0x9fe   :  { %2537 = vmatpush3.bf16.msra.mxu1 %v2725_v9 }
 0x9ff   :  { %2538 = vmatprep.subr.bf16.mxu1 %v2830_v14 }
 0xa02   :  { %2539 = vmatpush3.bf16.msra.mxu1 %v2726_v10 }
 0xa03   :  { %2540 = vmatprep.subr.bf16.mxu1 %v2830_v14 }
 0xa06   :  { %2541 = vmatpush3.bf16.msra.mxu1 %v2727_v11  ;;  %v2258_v11 = vld [vmem:[%s3437_s4 + $0x6] ss:$0 sm:$0xff] }
 0xa07   :  { %2542 = vmatprep.subr.bf16.mxu1 %v2830_v14 }
 0xa0a   :  { %2543 = vmatpush3.bf16.msra.mxu1 %v2728_v12 }
 0xa0b   :  { %2578 = vmatprep.subr.bf16.mxu1 %v2830_v14 }
 0xac0   :  { %v813_v26 = vpop.f32.mrb[20].mxu1 }
 0xac1   :  { %v814_v60 = vadd.f32 %v2241_v29, %v813_v26  ;;  %v2518_v22 = vpop.f32.mrb[21].mxu1 }
 0xac2   :  { %v816_v30 = vpop.f32.mrb[22].mxu1 }
 0xac3   :  { %v817_v31 = vadd.f32 %v2241_v29, %v816_v30  ;;  %v2519_v8 = vpop.f32.mrb[23].mxu1  ;;  %v820_v32 = vadd.f32 %v814_v60, %v2968_v58 }
 0xac5   :  { %v824_v33 = vsel %vm46_vm1, %v820_v32, 0.0  ;;  %v821_v34 = vadd.f32 %v817_v31, %v2970_v59  ;;  %v2719_v59 = vld [vmem:[%s3436_s3 + $0x4] ss:$12 sps:$4 sm:$0xff]  }
 0xac6   :  { %825 = vadd.xlane.f32.xlu0 %v824_v33  ;;  %2521 = vmatpush3.bf16.msra.mxu0 %v2719_v59 }
 0xac7   :  { %v827_v35 = vsel %vm46_vm1, %v821_v34, 0.0  ;;  %2522 = vmatprep.subr.bf16.mxu0 %v2830_v14 }
 0xac8   :  { %828 = vadd.xlane.f32.xlu1 %v827_v35 }
 0xaca   :  { %2523 = vmatpush3.bf16.msra.mxu0 %v2720_v46 }
 0xacb   :  { %2548 = vmatprep.subr.bf16.mxu0 %v2830_v14 }
 0xb53   :  { %v826_v36 = vpop.xlane.xlu0 %825 }
 0xb54   :  { %v830_v15 = vmul.f32 0.03125, %v826_v36 }
 0xb55   :  { %v829_v38 = vpop.xlane.xlu1 %828 }
 0xb56   :  { %v832_v39 = vsub.f32 %v820_v32, %v830_v15  ;;  %v831_v41 = vmul.f32 0.03125, %v829_v38 }
 0xb58   :  { %v833_v42 = vsub.f32 %v821_v34, %v831_v41  ;;  %v834_v43 = vmul.f32 %v832_v39, %v832_v39  ;;  %v2249_v41 = vld [vmem:[%s3437_s4 + $0x5] ss:$0 sm:$0xff] }
 0xb5a   :  { %v836_v44 = vsel %vm46_vm1, %v834_v43, 0.0  ;;  %v835_v45 = vmul.f32 %v833_v42, %v833_v42 }
 0xb5b   :  { %837 = vadd.xlane.f32.xlu0 %v836_v44 }
 0xb5c   :  { %v839_v58 = vsel %vm46_vm1, %v835_v45, 0.0 }
 0xb5f   :  { %840 = vadd.xlane.f32.xlu0 %v839_v58 }
 0xbe8   :  { %v838_v47 = vpop.xlane.xlu0 %837 }
 0xbe9   :  { %v842_v48 = vmul.f32 0.03125, %v838_v47 }
 0xbeb   :  { %v844_v49 = vadd.f32 1e-12, %v842_v48 }
 0xbec   :  { %v841_v50 = vpop.xlane.xlu0 %840 }
 0xbed   :  { %2763 = vrsqrt.f32 %v844_v49  ;;  %v843_v51 = vmul.f32 0.03125, %v841_v50  ;;  %v3167_v50 = vld [vmem:[%s3436_s3 + $0xc0] ss:$12 sps:$4 sm:$0xff]  }
 0xbef   :  { %v845_v52 = vadd.f32 1e-12, %v843_v51  ;;  %v3174_v51 = vld [vmem:[%s3436_s3 + $0xd8] ss:$12 sps:$4 sm:$0xff]  }
 0xbf1   :  { %2765 = vrsqrt.f32 %v845_v52 }
 0xbf7   :  { %v2764_v53 = vpop.eup %2763 }
 0xbf8   :  { %v848_v54 = vmul.f32 %v2764_v53, %v832_v39 }
 0xbfa   :  { %v854_v57 = vmul.f32 %v2243_v55, %v848_v54 }
 0xbfb   :  { %v2766_v56 = vpop.eup %2765 }
 0xbfc   :  { %v849_v61 = vmul.f32 %v2766_v56, %v833_v42  ;;  %v3111_v0 = vadd.f32 %v2244_v62, %v854_v57 }
 0xbfe   :  { %v855_v63 = vmul.f32 %v2243_v55, %v849_v61 }
 0xc00   :  { %v3113_v40 = vadd.f32 %v2244_v62, %v855_v63 }
 0xc02   :  { %v862_v1 = vpack.c.bf16 %v3113_v40, %v3111_v0 }
 0xc04   :  { %2525 = vmatmul.mubr.msk.bf16.vlgmr.msra.gmra.mrb[24].mxu0 %vm46_vm1, %v862_v1 }
 0xc05   :  { %2552 = vmatprep.mubr.msk.bf16.mxu0 %vm2833_vm4, %v2830_v14  ;;  %2549 = vmatpush3.bf16.msra.mxu0 %v3167_v50 }
 0xc06   :  { %2550 = vmatprep.subr.bf16.mxu0 %v2830_v14 }
 0xc09   :  { %2551 = vmatpush3.bf16.msra.mxu0 %v3174_v51 }
 0xc0a   :  { %2556 = vmatprep.subr.bf16.mxu0 %v2830_v14 }
 0xcd7   :  { %v921_v17 = vpop.f32.mrb[24].mxu0 }
 0xcd8   :  { %v922_v18 = vadd.f32 %v2245_v13, %v921_v17  ;;  %v2526_v19 = vpop.f32.mrb[25].mxu0 }
 0xcd9   :  { %v924_v2 = vpop.f32.mrb[26].mxu0  ;;  %v2259_v19 = vld [vmem:[%s3437_s4 + $0x7] ss:$0 sm:$0xff] }
 0xcda   :  { %v928_v20 = vmul.f32 %v922_v18, %v922_v18  ;;  %v925_v21 = vadd.f32 %v2245_v13, %v924_v2  ;;  %v2527_v28 = vpop.f32.mrb[27].mxu0 }
 0xcdc   :  { %v930_v23 = vmul.f32 %v928_v20, %v922_v18  ;;  %v929_v24 = vmul.f32 %v925_v21, %v925_v21 }
 0xcde   :  { %v932_v25 = vmul.f32 0.044715, %v930_v23  ;;  %v931_v29 = vmul.f32 %v929_v24, %v925_v21 }
 0xce0   :  { %v934_v26 = vadd.f32 %v932_v25, %v922_v18  ;;  %v933_v60 = vmul.f32 0.044715, %v931_v29 }
 0xce2   :  { %v936_v22 = vmul.f32 0.7978846, %v934_v26  ;;  %v935_v30 = vadd.f32 %v933_v60, %v925_v21 }
 0xce4   :  { %2767 = vtanh.f32 %v936_v22  ;;  %v937_v31 = vmul.f32 0.7978846, %v935_v30 }
 0xce6   :  { %2769 = vtanh.f32 %v937_v31 }
 0xcee   :  { %v2768_v8 = vpop.eup %2767 }
 0xcef   :  { %v940_v32 = vadd.f32 1.0, %v2768_v8 }
 0xcf0   :  { %v2770_v33 = vpop.eup %2769 }
 0xcf1   :  { %v942_v34 = vmul.f32 0.5, %v940_v32  ;;  %v941_v35 = vadd.f32 1.0, %v2770_v33 }
 0xcf3   :  { %v943_v36 = vmul.f32 0.5, %v941_v35  ;;  %v944_v15 = vmul.f32 %v942_v34, %v922_v18 }
 0xcf5   :  { %v945_v38 = vmul.f32 %v943_v36, %v925_v21 }
 0xcf7   :  { %v946_v39 = vpack.c.bf16 %v945_v38, %v944_v15 }
 0xcf9   :  { %2545 = vmatmul.mubr.bf16.vlgmr.msra.gmra.mrb[24].mxu1 %v946_v39 }
 0xcfa   :  { %2580 = vmatprep.mubr.msk.bf16.mxu1 %vm2833_vm4, %v2830_v14 }
 0xdcc   :  { %v1050_v42 = vpop.f32.mrb[24].mxu1 }
 0xdcd   :  { %v1051_v43 = vadd.f32 %v2249_v41, %v1050_v42  ;;  %v2546_v44 = vpop.f32.mrb[25].mxu1 }
 0xdce   :  { %v1053_v45 = vpop.f32.mrb[26].mxu1 }
 0xdcf   :  { %v1054_v58 = vadd.f32 %v2249_v41, %v1053_v45  ;;  %v2547_v59 = vpop.f32.mrb[27].mxu1  ;;  %v1057_v46 = vadd.f32 %v1051_v43, %v3111_v0 }
 0xdd1   :  { %v1061_v47 = vsel %vm46_vm1, %v1057_v46, 0.0  ;;  %v1058_v48 = vadd.f32 %v1054_v58, %v3113_v40  ;;  %v3191_v40 = vld [vmem:[%s3437_s4 + $0x8] ss:$0 sm:$0xff] }
 0xdd2   :  { %1062 = vadd.xlane.f32.xlu1 %v1061_v47 }
 0xdd3   :  { %v1064_v49 = vsel %vm46_vm1, %v1058_v48, 0.0 }
 0xdd4   :  { %1065 = vadd.xlane.f32.xlu0 %v1064_v49 }
 0xe5f   :  { %v1063_v52 = vpop.xlane.xlu1 %1062 }
 0xe60   :  { %v1067_v53 = vmul.f32 0.03125, %v1063_v52 }
 0xe61   :  { %v1066_v54 = vpop.xlane.xlu0 %1065 }
 0xe62   :  { %v1069_v55 = vsub.f32 %v1057_v46, %v1067_v53  ;;  %v1068_v56 = vmul.f32 0.03125, %v1066_v54 }
 0xe64   :  { %v1070_v57 = vsub.f32 %v1058_v48, %v1068_v56  ;;  %v1071_v61 = vmul.f32 %v1069_v55, %v1069_v55 }
 0xe66   :  { %v1073_v62 = vsel %vm46_vm1, %v1071_v61, 0.0  ;;  %v1072_v63 = vmul.f32 %v1070_v57, %v1070_v57 }
 0xe67   :  { %1074 = vadd.xlane.f32.xlu1 %v1073_v62 }
 0xe68   :  { %v1076_v0 = vsel %vm46_vm1, %v1072_v63, 0.0 }
 0xe69   :  { %1077 = vadd.xlane.f32.xlu0 %v1076_v0 }
 0xe78   :  { %1167 = vrot.lane.b32.xlu1 %v3167_v50, %s2831_s16 }
 0xe7c   :  { %1218 = vrot.lane.b32.xlu1 %v3167_v50, %s2832_s17 }
 0xe7f   :  { %1169 = vrot.lane.b32.xlu0 %v3174_v51, %s2831_s16 }
 0xe80   :  { %1220 = vrot.lane.b32.xlu1 %v3174_v51, %s2832_s17 }
 0xe83   :  { %1174 = vrot.lane.b32.xlu0 %v3191_v40, %s2831_s16 }
 0xef4   :  { %v1075_v1 = vpop.xlane.xlu1 %1074 }
 0xef5   :  { %v1079_v3 = vmul.f32 0.03125, %v1075_v1 }
 0xef6   :  { %v1078_v4 = vpop.xlane.xlu0 %1077 }
 0xef7   :  { %v1081_v5 = vadd.f32 1e-12, %v1079_v3  ;;  %v1080_v6 = vmul.f32 0.03125, %v1078_v4 }
 0xef8   :  { %v1168_v28 = vpop.permute.xlu1 %1167 }
 0xef9   :  { %2771 = vrsqrt.f32 %v1081_v5  ;;  %v1082_v9 = vadd.f32 1e-12, %v1080_v6 }
 0xefa   :  { %v1170_v24 = vpop.permute.xlu0 %1169 }
 0xefb   :  { %2773 = vrsqrt.f32 %v1082_v9 }
 0xefc   :  { %v1219_v25 = vpop.permute.xlu1 %1218 }
 0xefe   :  { %v1175_v33 = vpop.permute.xlu0 %1174 }
 0xf00   :  { %v1221_v29 = vpop.permute.xlu1 %1220 }
 0xf03   :  { %v2772_v10 = vpop.eup %2771 }
 0xf04   :  { %v1085_v12 = vmul.f32 %v2772_v10, %v1069_v55 }
 0xf05   :  { %v2774_v13 = vpop.eup %2773 }
 0xf06   :  { %v1091_v17 = vmul.f32 %v2258_v11, %v1085_v12  ;;  %v1086_v18 = vmul.f32 %v2774_v13, %v1070_v57 }
 0xf08   :  { %v1092_v2 = vmul.f32 %v2258_v11, %v1086_v18  ;;  %v3201_v20 = vadd.f32 %v2259_v19, %v1091_v17 }
 0xf0a   :  { %v3203_v21 = vadd.f32 %v2259_v19, %v1092_v2 }
 0xf0c   :  { %v3207_v23 = vpack.c.bf16 %v3203_v21, %v3201_v20 }
 0xf0e   :  { %2553 = vmatmul.mubr.msk.bf16.vlgmr.msra.gmra.mrb[28].mxu0 %vm46_vm1, %v3207_v23 }
 0xf0f   :  { %2557 = vmatpush3.bf16.msra.mxu0 %v1168_v28  ;;  %2560 = vmatprep.mubr.msk.bf16.mxu0 %vm2833_vm4, %v2830_v14 }
 0xf10   :  { %2558 = vmatprep.subr.bf16.mxu0 %v2830_v14 }
 0xf13   :  { %2559 = vmatpush3.bf16.msra.mxu0 %v1170_v24 }
 0xf14   :  { %2564 = vmatprep.subr.bf16.mxu0 %v2830_v14 }
 0xf16   :  { %2561 = vmatmul.mubr.msk.bf16.vlgmr.msra.gmra.mrb[32].mxu0 %vm46_vm1, %v3207_v23 }
 0xf17   :  { %2565 = vmatpush3.bf16.msra.mxu0 %v1219_v25  ;;  %2568 = vmatprep.mubr.msk.bf16.mxu0 %vm2833_vm4, %v2830_v14 }
 0xf18   :  { %2566 = vmatprep.subr.bf16.mxu0 %v2830_v14 }
 0xf1b   :  { %2567 = vmatpush3.bf16.msra.mxu0 %v1221_v29 }
 0xf1c   :  { %2572 = vmatprep.subr.bf16.mxu0 %v2830_v14 }
 0xf1e   :  { %2569 = vmatmul.mubr.msk.bf16.vlgmr.msra.gmra.mrb[36].mxu0 %vm46_vm1, %v3207_v23 }
 0xf1f   :  { %2574 = vmatprep.mubr.msk.bf16.mxu0 %vm2833_vm4, %v2830_v14 }
 0xfe1   :  { %v1160_v26 = vpop.f32.mrb[28].mxu0 }
 0xfe2   :  { %v2554_v60 = vpop.f32.mrb[29].mxu0  ;;  %v1161_v30 = vadd.f32 %v3191_v40, %v1160_v26 }
 0xfe3   :  { %v1163_v22 = vpop.f32.mrb[30].mxu0 }
 0xfe4   :  { %v1164_v31 = vadd.f32 %v3191_v40, %v1163_v22  ;;  %v2555_v8 = vpop.f32.mrb[31].mxu0 }
 0xfe6   :  { %v1268_v32 = vpack.c.bf16 %v1164_v31, %v1161_v30 }
 0xfe9   :  { %v1211_v34 = vpop.f32.mrb[32].mxu0 }
 0xfea   :  { %v2562_v35 = vpop.f32.mrb[33].mxu0  ;;  %v1212_v15 = vadd.f32 %v1211_v34, %v1175_v33 }
 0xfeb   :  { %v1214_v36 = vpop.f32.mrb[34].mxu0 }
 0xfec   :  { %v1215_v38 = vadd.f32 %v1214_v36, %v1175_v33  ;;  %v2563_v39 = vpop.f32.mrb[35].mxu0 }
 0xfee   :  { %v1269_v41 = vpack.c.bf16 %v1215_v38, %v1212_v15 }
 0xff0   :  { %v1274_v42 = vsel %vm363_vm5, %v1269_v41, 0 }
 0xff1   :  { %v1261_v43 = vpop.f32.mrb[36].mxu0  ;;  %2573 = vmatpush3.bf16.xpose.msra.mxu0 %v1274_v42 }
 0xff2   :  { %v2570_v44 = vpop.f32.mrb[37].mxu0  ;;  %2584 = vmatprep.subr.bf16.mxu0 %v2830_v14 }
 0xff3   :  { %v1264_v45 = vpop.f32.mrb[38].mxu0 }
 0xff4   :  { %v2571_v58 = vpop.f32.mrb[39].mxu0 }
 0xff8   :  { %2575 = vmatmul.mubr.msk.bf16.vlgmr.msra.gmra.mrb[40].mxu0 %vm363_vm5, %v1268_v32 }
 0xff9   :  { %2588 = vmatprep.mubr.msk.bf16.mxu0 %vm2833_vm4, %v2830_v14 }
0x10cb   :  { %v1310_v59 = vpop.f32.mrb[40].mxu0 }
0x10cc   :  { %v1317_v46 = vmul.f32 0.25, %v1310_v59  ;;  %v2576_v47 = vpop.f32.mrb[41].mxu0 }
0x10cd   :  { %v1313_v48 = vpop.f32.mrb[42].mxu0 }
0x10ce   :  { %v1318_v49 = vmul.f32 0.25, %v1313_v48  ;;  %v2577_v52 = vpop.f32.mrb[43].mxu0  ;;  %v1319_v53 = vadd.f32 %v1317_v46, %v3003_v27 }
0x10d0   :  { %v1321_v54 = vsel %vm363_vm5, %v1319_v53, -inf  ;;  %v1320_v55 = vadd.f32 %v1318_v49, %v3006_v37 }
0x10d1   :  { %1322 = vmax.xlane.f32.xlu1 %v1321_v54 }
0x10d2   :  { %v1324_v56 = vsel %vm363_vm5, %v1320_v55, -inf }
0x10d3   :  { %1325 = vmax.xlane.f32.xlu0 %v1324_v56 }
0x10e2   :  { %1439 = vrot.lane.b32.xlu1 %v3167_v50, %s2836_s1 }
0x115e   :  { %v1323_v57 = vpop.xlane.xlu1 %1322 }
0x115f   :  { %v1327_v61 = vsub.f32 %v1319_v53, %v1323_v57 }
0x1160   :  { %v1326_v62 = vpop.xlane.xlu0 %1325 }
0x1161   :  { %v1329_v63 = vmul.f32 1.442695, %v1327_v61  ;;  %v1328_v0 = vsub.f32 %v1320_v55, %v1326_v62 }
0x1162   :  { %v1440_v9 = vpop.permute.xlu1 %1439 }
0x1163   :  { %2775 = vpow2.f32 %v1329_v63  ;;  %v1331_v1 = vmul.f32 1.442695, %v1328_v0 }
0x1165   :  { %2777 = vpow2.f32 %v1331_v1 }
0x116d   :  { %v2776_v3 = vpop.eup %2775 }
0x116e   :  { %v1333_v4 = vsel %vm363_vm5, %v2776_v3, 0.0 }
0x116f   :  { %v2778_v5 = vpop.eup %2777  ;;  %1334 = vadd.xlane.f32.xlu0 %v1333_v4 }
0x1170   :  { %v1336_v6 = vsel %vm363_vm5, %v2778_v5, 0.0 }
0x1171   :  { %1337 = vadd.xlane.f32.xlu1 %v1336_v6 }
0x1182   :  { %1441 = vrot.lane.b32.xlu1 %v3174_v51, %s2836_s1 }
0x1185   :  { %1224 = vrot.lane.b32.xlu0 %v3191_v40, %s2832_s17 }
0x1186   :  { %1391 = vrot.lane.b32.xlu1 %v3174_v51, %s2837_s26 }
0x1189   :  { %1389 = vrot.lane.b32.xlu0 %v3167_v50, %s2837_s26 }
0x118a   :  { %1395 = vrot.lane.b32.xlu1 %v3191_v40, %s2837_s26 }
0x118d   :  { %1445 = vrot.lane.b32.xlu0 %v3191_v40, %s2836_s1 }
0x118e   :  { %1491 = vrot.lane.b32.xlu1 %v3174_v51, %s2838_s27 }
0x1191   :  { %1489 = vrot.lane.b32.xlu0 %v3167_v50, %s2838_s27 }
0x11fc   :  { %v1335_v10 = vpop.xlane.xlu0 %1334 }
0x11fd   :  { %2779 = vrcp.f32 %v1335_v10 }
0x11fe   :  { %v1338_v11 = vpop.xlane.xlu1 %1337 }
0x11ff   :  { %2781 = vrcp.f32 %v1338_v11 }
0x1200   :  { %v1225_v12 = vpop.permute.xlu0 %1224 }
0x1201   :  { %v1262_v13 = vadd.f32 %v1261_v43, %v1225_v12  ;;  %v1265_v17 = vadd.f32 %v1264_v45, %v1225_v12 }
0x1202   :  { %v1442_v18 = vpop.permute.xlu1 %1441 }
0x1203   :  { %v1344_v19 = vpack.c.bf16 %v1265_v17, %v1262_v13 }
0x1204   :  { %v1390_v2 = vpop.permute.xlu0 %1389 }
0x1205   :  { %2579 = vmatpush3.bf16.msra.mxu1 %v1344_v19  ;;  %2585 = vmatpush3.bf16.msra.mxu0 %v1390_v2 }
0x1206   :  { %v1392_v28 = vpop.permute.xlu1 %1391  ;;  %2586 = vmatprep.subr.bf16.mxu0 %v2830_v14  ;;  %2592 = vmatprep.subr.bf16.mxu1 %v2830_v14 }
0x1207   :  { %v2780_v24 = vpop.eup %2779 }
0x1208   :  { %v1446_v25 = vpop.permute.xlu0 %1445  ;;  %v1341_v26 = vmul.f32 %v2780_v24, %v2776_v3 }
0x1209   :  { %v2782_v29 = vpop.eup %2781  ;;  %2587 = vmatpush3.bf16.msra.mxu0 %v1392_v28 }
0x120a   :  { %v1342_v60 = vmul.f32 %v2782_v29, %v2778_v5  ;;  %v1396_v22 = vpop.permute.xlu1 %1395  ;;  %2600 = vmatprep.subr.bf16.mxu0 %v2830_v14 }
0x120c   :  { %2589 = vmatmul.mubr.msk.bf16.vlgmr.msra.gmra.mrb[44].mxu0 %vm46_vm1, %v3207_v23  ;;  %v1490_v30 = vpop.permute.xlu0 %1489  ;;  %v1343_v31 = vpack.c.bf16 %v1342_v60, %v1341_v26 }
0x120d   :  { %2601 = vmatpush3.bf16.msra.mxu0 %v1490_v30  ;;  %2604 = vmatprep.mubr.msk.bf16.mxu0 %vm2833_vm4, %v2830_v14 }
0x120e   :  { %2581 = vmatmul.mubr.msk.bf16.vlgmr.msra.gmra.mrb[28].mxu1 %vm363_vm5, %v1343_v31  ;;  %v1492_v8 = vpop.permute.xlu1 %1491  ;;  %2602 = vmatprep.subr.bf16.mxu0 %v2830_v14 }
0x120f   :  { %2593 = vmatpush3.bf16.msra.mxu1 %v1440_v9  ;;  %2596 = vmatprep.mubr.msk.bf16.mxu1 %vm2833_vm4, %v2830_v14 }
0x1210   :  { %2594 = vmatprep.subr.bf16.mxu1 %v2830_v14 }
0x1211   :  { %2603 = vmatpush3.bf16.msra.mxu0 %v1492_v8 }
0x1212   :  { %2614 = vmatprep.subr.bf16.mxu0 %v2830_v14 }
0x1213   :  { %2595 = vmatpush3.bf16.msra.mxu1 %v1442_v18 }
0x1214   :  { %2605 = vmatmul.mubr.msk.bf16.vlgmr.msra.gmra.mrb[48].mxu0 %vm46_vm1, %v3207_v23  ;;  %2608 = vmatprep.subr.bf16.mxu1 %v2830_v14 }
0x1215   :  { %2616 = vmatprep.mubr.msk.bf16.mxu0 %vm2833_vm4, %v2830_v14 }
0x1216   :  { %2597 = vmatmul.mubr.msk.bf16.vlgmr.msra.gmra.mrb[32].mxu1 %vm46_vm1, %v3207_v23 }
0x1217   :  { %2610 = vmatprep.mubr.msk.bf16.mxu1 %vm2833_vm4, %v2830_v14 }
0x12df   :  { %v1432_v32 = vpop.f32.mrb[44].mxu0 }
0x12e0   :  { %v2590_v33 = vpop.f32.mrb[45].mxu0  ;;  %v1433_v36 = vadd.f32 %v1432_v32, %v1396_v22 }
0x12e1   :  { %v3278_v34 = vpop.f32.mrb[28].mxu1  ;;  %v1435_v35 = vpop.f32.mrb[46].mxu0 }
0x12e2   :  { %v1436_v15 = vadd.f32 %v1435_v35, %v1396_v22  ;;  %v2582_v38 = vpop.f32.mrb[29].mxu1  ;;  %v2591_v39 = vpop.f32.mrb[47].mxu0 }
0x12e3   :  { %v3280_v41 = vpop.f32.mrb[30].mxu1 }
0x12e4   :  { %v1539_v42 = vpack.c.bf16 %v1436_v15, %v1433_v36  ;;  %v2583_v43 = vpop.f32.mrb[31].mxu1 }
0x12e7   :  { %v1532_v44 = vpop.f32.mrb[48].mxu0 }
0x12e8   :  { %v2606_v45 = vpop.f32.mrb[49].mxu0 }
0x12e9   :  { %v1482_v58 = vpop.f32.mrb[32].mxu1  ;;  %v1535_v23 = vpop.f32.mrb[50].mxu0 }
0x12ea   :  { %v2598_v59 = vpop.f32.mrb[33].mxu1  ;;  %v2607_v46 = vpop.f32.mrb[51].mxu0  ;;  %v1483_v48 = vadd.f32 %v1482_v58, %v1446_v25 }
0x12eb   :  { %v1485_v47 = vpop.f32.mrb[34].mxu1 }
0x12ec   :  { %v1486_v49 = vadd.f32 %v1485_v47, %v1446_v25  ;;  %v2599_v52 = vpop.f32.mrb[35].mxu1 }
0x12ee   :  { %v1540_v53 = vpack.c.bf16 %v1486_v49, %v1483_v48 }
0x12f0   :  { %v1545_v54 = vsel %vm363_vm5, %v1540_v53, 0 }
0x12f1   :  { %2609 = vmatpush3.bf16.xpose.msra.mxu1 %v1545_v54 }
0x12f2   :  { %2620 = vmatprep.subr.bf16.mxu1 %v2830_v14 }
0x12f8   :  { %2611 = vmatmul.mubr.msk.bf16.vlgmr.msra.gmra.mrb[36].mxu1 %vm363_vm5, %v1539_v42 }
0x12f9   :  { %2624 = vmatprep.mubr.msk.bf16.mxu1 %vm2833_vm4, %v2830_v14 }
0x13cb   :  { %v1581_v55 = vpop.f32.mrb[36].mxu1 }
0x13cc   :  { %v1588_v56 = vmul.f32 0.25, %v1581_v55  ;;  %v2612_v57 = vpop.f32.mrb[37].mxu1 }
0x13cd   :  { %v1584_v61 = vpop.f32.mrb[38].mxu1 }
0x13ce   :  { %v1589_v62 = vmul.f32 0.25, %v1584_v61  ;;  %v2613_v63 = vpop.f32.mrb[39].mxu1  ;;  %v1590_v0 = vadd.f32 %v1588_v56, %v3003_v27 }
0x13cf   :  { %v2732_v63 = vld [vmem:[%s3436_s3 + $0xdc] ss:$12 sps:$4 sm:$0xff]  }
0x13d0   :  { %v1592_v1 = vsel %vm363_vm5, %v1590_v0, -inf  ;;  %v1591_v3 = vadd.f32 %v1589_v62, %v3006_v37 }
0x13d1   :  { %1593 = vmax.xlane.f32.xlu0 %v1592_v1 }
0x13d2   :  { %v1595_v4 = vsel %vm363_vm5, %v1591_v3, -inf }
0x13d3   :  { %1596 = vmax.xlane.f32.xlu1 %v1595_v4 }
0x13e4   :  { %1495 = vrot.lane.b32.xlu1 %v3191_v40, %s2838_s27 }
0x145e   :  { %v1594_v5 = vpop.xlane.xlu0 %1593 }
0x145f   :  { %v1598_v6 = vsub.f32 %v1590_v0, %v1594_v5 }
0x1460   :  { %v1597_v9 = vpop.xlane.xlu1 %1596 }
0x1461   :  { %v1600_v10 = vmul.f32 1.442695, %v1598_v6  ;;  %v1599_v11 = vsub.f32 %v1591_v3, %v1597_v9 }
0x1463   :  { %2783 = vpow2.f32 %v1600_v10  ;;  %v1602_v12 = vmul.f32 1.442695, %v1599_v11  ;;  %v2283_v11 = vld [vmem:[%s3437_s4 + $0xa] ss:$0 sm:$0xff] }
0x1464   :  { %v1496_v13 = vpop.permute.xlu1 %1495 }
0x1465   :  { %2785 = vpow2.f32 %v1602_v12  ;;  %v1533_v27 = vadd.f32 %v1532_v44, %v1496_v13  ;;  %v1536_v17 = vadd.f32 %v1535_v23, %v1496_v13 }
0x1467   :  { %v1615_v18 = vpack.c.bf16 %v1536_v17, %v1533_v27  ;;  %v2284_v17 = vld [vmem:[%s3437_s4 + $0xb] ss:$0 sm:$0xff] }
0x1469   :  { %2615 = vmatpush3.bf16.msra.mxu0 %v1615_v18 }
0x146a   :  { %2628 = vmatprep.subr.bf16.mxu0 %v2830_v14 }
0x146d   :  { %v2784_v37 = vpop.eup %2783 }
0x146e   :  { %v1604_v19 = vsel %vm363_vm5, %v2784_v37, 0.0 }
0x146f   :  { %v2786_v2 = vpop.eup %2785  ;;  %1605 = vadd.xlane.f32.xlu0 %v1604_v19 }
0x1470   :  { %v1607_v40 = vsel %vm363_vm5, %v2786_v2, 0.0 }
0x1473   :  { %1608 = vadd.xlane.f32.xlu0 %v1607_v40  ;;  %v2733_v40 = vld [vmem:[%s3436_s3 + $0xc8] ss:$12 sps:$4 sm:$0xff]  }
0x1489   :  { %1676 = vrot.lane.b32.xlu0 %v3167_v50, %s2839_s28 }
0x14fc   :  { %v1606_v28 = vpop.xlane.xlu0 %1605 }
0x14fd   :  { %2787 = vrcp.f32 %v1606_v28  ;;  %v2734_v28 = vld [vmem:[%s3436_s3 + $0xe0] ss:$12 sps:$4 sm:$0xff]  }
0x1500   :  { %v1609_v24 = vpop.xlane.xlu0 %1608 }
0x1501   :  { %2789 = vrcp.f32 %v1609_v24  ;;  %v2735_v24 = vld [vmem:[%s3436_s3 + $0xf8] ss:$12 sps:$4 sm:$0xff]  }
0x1504   :  { %v1677_v30 = vpop.permute.xlu0 %1676 }
0x1505   :  { %2621 = vmatpush3.bf16.msra.mxu1 %v1677_v30  ;;  %v2290_v30 = vld [vmem:[%s3437_s4 + $0xc] ss:$0 sm:$0xff] }
0x1506   :  { %2622 = vmatprep.subr.bf16.mxu1 %v2830_v14 }
0x1507   :  { %v2788_v25 = vpop.eup %2787 }
0x1508   :  { %v1612_v26 = vmul.f32 %v2788_v25, %v2784_v37  ;;  %v2736_v25 = vld [vmem:[%s3436_s3 + $0x110] ss:$12 sps:$4 sm:$0xff]  }
0x150b   :  { %v2790_v29 = vpop.eup %2789 }
0x150c   :  { %v1613_v60 = vmul.f32 %v2790_v29, %v2786_v2  ;;  %v2737_v29 = vld [vmem:[%s3436_s3 + $0x128] ss:$12 sps:$4 sm:$0xff]  }
0x150e   :  { %v1614_v22 = vpack.c.bf16 %v1613_v60, %v1612_v26  ;;  %v2738_v26 = vld [vmem:[%s3436_s3 + $0x140] ss:$12 sps:$4 sm:$0xff]   ;;  %v2739_v60 = vld [vmem:[%s3436_s3 + $0x158] ss:$12 sps:$4 sm:$0xff]  }
0x1510   :  { %2617 = vmatmul.mubr.msk.bf16.vlgmr.msra.gmra.mrb[52].mxu0 %vm363_vm5, %v1614_v22  ;;  %v2740_v22 = vld [vmem:[%s3436_s3 + $0x170] ss:$12 sps:$4 sm:$0xff]  }
0x1511   :  { %2632 = vmatprep.mubr.msk.bf16.mxu0 %vm2833_vm4, %v2830_v14 }
0x15e3   :  { %v1653_v31 = vpop.f32.mrb[52].mxu0 }
0x15e4   :  { %v2618_v50 = vpop.f32.mrb[53].mxu0 }
0x15e5   :  { %v1656_v8 = vpop.f32.mrb[54].mxu0 }
0x15e6   :  { %v2711_v32 = vpack.i.bf16 %v1656_v8, %v1653_v31  ;;  %v2619_v33 = vpop.f32.mrb[55].mxu0 }
0x15e8   :  { %2712 = vrot.lane.b32.xlu1 %v2711_v32, %s2840_s29 }
0x15ec   :  { %1678 = vrot.lane.b32.xlu1 %v3174_v51, %s2839_s28  ;;  %v2279_v51 = vld [vmem:[%s3437_s4 + $0x9] ss:$0 sm:$0xff] }
0x165a   :  { %v2713_v35 = vpop.permute.xlu1 %2712 }
0x165b   :  { %v2715_v36 = vunpack.i.h.bf16 %v2713_v35  ;;  %v2714_v15 = vunpack.i.l.bf16 %v2713_v35 }
0x165d   :  { %v1669_v38 = vsel %vm363_vm5, %v3280_v41, %v2715_v36  ;;  %v1668_v39 = vsel %vm363_vm5, %v3278_v34, %v2714_v15 }
0x165e   :  { %v1670_v42 = vpack.c.bf16 %v1669_v38, %v1668_v39  ;;  %v1679_v43 = vpop.permute.xlu1 %1678 }
0x165f   :  { %2623 = vmatpush3.bf16.msra.mxu1 %v1679_v43 }
0x1660   :  { %2636 = vmatprep.subr.bf16.mxu1 %v2830_v14 }
0x1662   :  { %2625 = vmatmul.mubr.msk.bf16.vlgmr.msra.gmra.mrb[40].mxu1 %vm46_vm1, %v1670_v42 }
0x1663   :  { %2652 = vmatprep.mubr.msk.bf16.mxu1 %vm2833_vm4, %v2830_v14  ;;  %2637 = vmatpush3.bf16.msra.mxu1 %v2733_v40 }
0x1664   :  { %2638 = vmatprep.subr.bf16.mxu1 %v2830_v14 }
0x1667   :  { %2639 = vmatpush3.bf16.msra.mxu1 %v2734_v28 }
0x1668   :  { %2640 = vmatprep.subr.bf16.mxu1 %v2830_v14 }
0x166b   :  { %2641 = vmatpush3.bf16.msra.mxu1 %v2735_v24 }
0x166c   :  { %2642 = vmatprep.subr.bf16.mxu1 %v2830_v14 }
0x166f   :  { %2643 = vmatpush3.bf16.msra.mxu1 %v2736_v25  ;;  %v2322_v25 = vld [vmem:[%s3437_s4 + $0xe] ss:$0 sm:$0xff] }
0x1670   :  { %2644 = vmatprep.subr.bf16.mxu1 %v2830_v14 }
0x1673   :  { %2645 = vmatpush3.bf16.msra.mxu1 %v2737_v29 }
0x1674   :  { %2646 = vmatprep.subr.bf16.mxu1 %v2830_v14 }
0x1677   :  { %2647 = vmatpush3.bf16.msra.mxu1 %v2738_v26 }
0x1678   :  { %2648 = vmatprep.subr.bf16.mxu1 %v2830_v14 }
0x167b   :  { %2649 = vmatpush3.bf16.msra.mxu1 %v2739_v60 }
0x167c   :  { %2650 = vmatprep.subr.bf16.mxu1 %v2830_v14 }
0x167f   :  { %2651 = vmatpush3.bf16.msra.mxu1 %v2740_v22 }
0x1735   :  { %v1719_v44 = vpop.f32.mrb[40].mxu1 }
0x1736   :  { %v1720_v45 = vadd.f32 %v2279_v51, %v1719_v44  ;;  %v2626_v41 = vpop.f32.mrb[41].mxu1 }
0x1737   :  { %v1722_v58 = vpop.f32.mrb[42].mxu1 }
0x1738   :  { %v1723_v23 = vadd.f32 %v2279_v51, %v1722_v58  ;;  %v2627_v34 = vpop.f32.mrb[43].mxu1  ;;  %v1726_v59 = vadd.f32 %v1720_v45, %v3201_v20 }
0x173a   :  { %v1730_v46 = vsel %vm46_vm1, %v1726_v59, 0.0  ;;  %v1727_v47 = vadd.f32 %v1723_v23, %v3203_v21  ;;  %v2731_v21 = vld [vmem:[%s3436_s3 + $0xc4] ss:$12 sps:$4 sm:$0xff]  }
0x173b   :  { %1731 = vadd.xlane.f32.xlu0 %v1730_v46  ;;  %2629 = vmatpush3.bf16.msra.mxu0 %v2731_v21 }
0x173c   :  { %v1733_v48 = vsel %vm46_vm1, %v1727_v47, 0.0  ;;  %2630 = vmatprep.subr.bf16.mxu0 %v2830_v14 }
0x173d   :  { %1734 = vadd.xlane.f32.xlu1 %v1733_v48 }
0x173f   :  { %2631 = vmatpush3.bf16.msra.mxu0 %v2732_v63 }
0x17c8   :  { %v1732_v49 = vpop.xlane.xlu0 %1731 }
0x17c9   :  { %v1736_v52 = vmul.f32 0.03125, %v1732_v49 }
0x17ca   :  { %v1735_v53 = vpop.xlane.xlu1 %1734 }
0x17cb   :  { %v1738_v54 = vsub.f32 %v1726_v59, %v1736_v52  ;;  %v1737_v55 = vmul.f32 0.03125, %v1735_v53  ;;  %v2311_v53 = vld [vmem:[%s3437_s4 + $0xd] ss:$0 sm:$0xff] }
0x17cd   :  { %v1739_v56 = vsub.f32 %v1727_v47, %v1737_v55  ;;  %v1740_v57 = vmul.f32 %v1738_v54, %v1738_v54 }
0x17cf   :  { %v1742_v61 = vsel %vm46_vm1, %v1740_v57, 0.0  ;;  %v1741_v62 = vmul.f32 %v1739_v56, %v1739_v56 }
0x17d0   :  { %1743 = vadd.xlane.f32.xlu0 %v1742_v61 }
0x17d1   :  { %v1745_v20 = vsel %vm46_vm1, %v1741_v62, 0.0 }
0x17d4   :  { %1746 = vadd.xlane.f32.xlu0 %v1745_v20 }
0x185d   :  { %v1744_v0 = vpop.xlane.xlu0 %1743 }
0x185e   :  { %v1748_v1 = vmul.f32 0.03125, %v1744_v0 }
0x1860   :  { %v1750_v3 = vadd.f32 1e-12, %v1748_v1 }
0x1861   :  { %v1747_v4 = vpop.xlane.xlu0 %1746 }
0x1862   :  { %2791 = vrsqrt.f32 %v1750_v3  ;;  %v1749_v5 = vmul.f32 0.03125, %v1747_v4 }
0x1864   :  { %v1751_v6 = vadd.f32 1e-12, %v1749_v5 }
0x1866   :  { %2793 = vrsqrt.f32 %v1751_v6 }
0x186c   :  { %v2792_v9 = vpop.eup %2791 }
0x186d   :  { %v1754_v10 = vmul.f32 %v2792_v9, %v1738_v54 }
0x186f   :  { %v1760_v13 = vmul.f32 %v2283_v11, %v1754_v10 }
0x1870   :  { %v2794_v12 = vpop.eup %2793 }
0x1871   :  { %v1755_v27 = vmul.f32 %v2794_v12, %v1739_v56  ;;  %v3335_v37 = vadd.f32 %v2284_v17, %v1760_v13 }
0x1873   :  { %v1761_v18 = vmul.f32 %v2283_v11, %v1755_v27  ;;  %v2841_v27 = vmov 0.0|0.0  }
0x1874   :  { %2687 = vmatprep.subr.bf16.mxu0 %v2841_v27 }
0x1875   :  { %v3337_v19 = vadd.f32 %v2284_v17, %v1761_v18  ;;  %v2741_v17 = vld [vmem:[%s3438_s5] sm:$0xff]  }
0x1877   :  { %v1768_v2 = vpack.c.bf16 %v3337_v19, %v3335_v37 }
0x1879   :  { %2633 = vmatmul.mubr.msk.bf16.vlgmr.msra.gmra.mrb[56].mxu0 %vm46_vm1, %v1768_v2 }
0x187a   :  { %2660 = vmatprep.mubr.msk.f32.mxu0 %vm2833_vm4, %v2830_v14 }
0x194c   :  { %v1827_v31 = vpop.f32.mrb[56].mxu0 }
0x194d   :  { %v1828_v50 = vadd.f32 %v2290_v30, %v1827_v31  ;;  %v2634_v8 = vpop.f32.mrb[57].mxu0  ;;  %v2323_v31 = vld [vmem:[%s3437_s4 + $0xf] ss:$0 sm:$0xff] }
0x194e   :  { %v1830_v32 = vpop.f32.mrb[58].mxu0 }
0x194f   :  { %v1834_v33 = vmul.f32 %v1828_v50, %v1828_v50  ;;  %v1831_v35 = vadd.f32 %v2290_v30, %v1830_v32  ;;  %v2635_v36 = vpop.f32.mrb[59].mxu0  ;;  %v2007_v30 = vmul.u32 8, %v2895_v7  ;;  %v2742_v7 = vld [vmem:[%s3438_s5 + $0x8] sm:$0xff]  }
0x1951   :  { %v1836_v15 = vmul.f32 %v1834_v33, %v1828_v50  ;;  %v1835_v38 = vmul.f32 %v1831_v35, %v1831_v35  ;;  %vm2008_vm11 = vcmp.eq.s32.totalorder %v2912_v16, %v2007_v30 }
0x1953   :  { %v1838_v39 = vmul.f32 0.044715, %v1836_v15  ;;  %v1837_v42 = vmul.f32 %v1835_v38, %v1831_v35 }
0x1955   :  { %v1840_v43 = vadd.f32 %v1838_v39, %v1828_v50  ;;  %v1839_v51 = vmul.f32 0.044715, %v1837_v42  ;;  %v2326_v42 = vld [vmem:[%s3435_s2 + $0x32] ss:$0 sm:$0xff] }
0x1957   :  { %v1842_v44 = vmul.f32 0.7978846, %v1840_v43  ;;  %v1841_v45 = vadd.f32 %v1839_v51, %v1831_v35 }
0x1959   :  { %2795 = vtanh.f32 %v1842_v44  ;;  %v1843_v41 = vmul.f32 0.7978846, %v1841_v45 }
0x195b   :  { %2797 = vtanh.f32 %v1843_v41 }
0x1963   :  { %v2796_v58 = vpop.eup %2795 }
0x1964   :  { %v1846_v23 = vadd.f32 1.0, %v2796_v58 }
0x1965   :  { %v2798_v34 = vpop.eup %2797 }
0x1966   :  { %v1848_v59 = vmul.f32 0.5, %v1846_v23  ;;  %v1847_v46 = vadd.f32 1.0, %v2798_v34 }
0x1968   :  { %v1849_v47 = vmul.f32 0.5, %v1847_v46  ;;  %v1850_v48 = vmul.f32 %v1848_v59, %v1828_v50 }
0x196a   :  { %v1851_v49 = vmul.f32 %v1849_v47, %v1831_v35  ;;  %v2324_v35 = vsel %vm2008_vm11, 1.0, %v2830_v14 }
0x196c   :  { %v1852_v52 = vpack.c.bf16 %v1851_v49, %v1850_v48 }
0x196e   :  { %2653 = vmatmul.mubr.bf16.vlgmr.msra.gmra.mrb[44].mxu1 %v1852_v52 }
0x1a41   :  { %v1956_v54 = vpop.f32.mrb[44].mxu1 }
0x1a42   :  { %v1957_v55 = vadd.f32 %v2311_v53, %v1956_v54  ;;  %v2654_v56 = vpop.f32.mrb[45].mxu1 }
0x1a43   :  { %v1959_v57 = vpop.f32.mrb[46].mxu1 }
0x1a44   :  { %v1960_v61 = vadd.f32 %v2311_v53, %v1959_v57  ;;  %v2655_v62 = vpop.f32.mrb[47].mxu1  ;;  %v1963_v20 = vadd.f32 %v1957_v55, %v3335_v37 }
0x1a46   :  { %v1967_v21 = vsel %vm46_vm1, %v1963_v20, 0.0  ;;  %v1964_v63 = vadd.f32 %v1960_v61, %v3337_v19 }
0x1a47   :  { %1968 = vadd.xlane.f32.xlu1 %v1967_v21 }
0x1a48   :  { %v1970_v0 = vsel %vm46_vm1, %v1964_v63, 0.0 }
0x1a49   :  { %1971 = vadd.xlane.f32.xlu0 %v1970_v0 }
0x1ad4   :  { %v1969_v1 = vpop.xlane.xlu1 %1968 }
0x1ad5   :  { %v1973_v3 = vmul.f32 0.03125, %v1969_v1 }
0x1ad6   :  { %v1972_v4 = vpop.xlane.xlu0 %1971 }
0x1ad7   :  { %v1975_v5 = vsub.f32 %v1963_v20, %v1973_v3  ;;  %v1974_v6 = vmul.f32 0.03125, %v1972_v4 }
0x1ad9   :  { %v1976_v9 = vsub.f32 %v1964_v63, %v1974_v6  ;;  %v1977_v10 = vmul.f32 %v1975_v5, %v1975_v5 }
0x1adb   :  { %v1979_v11 = vsel %vm46_vm1, %v1977_v10, 0.0  ;;  %v1978_v12 = vmul.f32 %v1976_v9, %v1976_v9 }
0x1adc   :  { %1980 = vadd.xlane.f32.xlu1 %v1979_v11 }
0x1add   :  { %v1982_v13 = vsel %vm46_vm1, %v1978_v12, 0.0 }
0x1ade   :  { %1983 = vadd.xlane.f32.xlu0 %v1982_v13 }
0x1aed   :  { %2156 = vrot.lane.b32.xlu1 %v2741_v17, %s2831_s16 }
0x1af4   :  { %2158 = vrot.lane.b32.xlu0 %v2742_v7, %s2831_s16 }
0x1b69   :  { %v1981_v18 = vpop.xlane.xlu1 %1980 }
0x1b6a   :  { %v1985_v37 = vmul.f32 0.03125, %v1981_v18 }
0x1b6b   :  { %v1984_v19 = vpop.xlane.xlu0 %1983 }
0x1b6c   :  { %v1987_v2 = vadd.f32 1e-12, %v1985_v37  ;;  %v1986_v40 = vmul.f32 0.03125, %v1984_v19 }
0x1b6d   :  { %v2157_v38 = vpop.permute.xlu1 %2156 }
0x1b6e   :  { %2799 = vrsqrt.f32 %v1987_v2  ;;  %v1988_v28 = vadd.f32 1e-12, %v1986_v40 }
0x1b6f   :  { %v2159_v39 = vpop.permute.xlu0 %2158 }
0x1b70   :  { %2801 = vrsqrt.f32 %v1988_v28 }
0x1b78   :  { %v2800_v24 = vpop.eup %2799 }
0x1b79   :  { %v1991_v29 = vmul.f32 %v2800_v24, %v1975_v5 }
0x1b7a   :  { %v2802_v26 = vpop.eup %2801 }
0x1b7b   :  { %v1992_v60 = vmul.f32 %v2802_v26, %v1976_v9  ;;  %v1997_v22 = vmul.f32 %v2322_v25, %v1991_v29 }
0x1b7d   :  { %v1998_v50 = vmul.f32 %v2322_v25, %v1992_v60  ;;  %v2003_v8 = vadd.f32 %v2323_v31, %v1997_v22 }
0x1b7f   :  { %v2004_v32 = vadd.f32 %v2323_v31, %v1998_v50 }
0x1b81   :  { %v2688_v33 = vpack.c.bf16 %v2004_v32, %v2003_v8 }
0x1b83   :  { %2689 = vmatpush3.bf16.msra.mxu0 %v2688_v33 }
0x1b84   :  { %2663 = vmatprep.subr.bf16.mxu0 %v2830_v14 }
0x1b86   :  { %2661 = vmatmul.mubr.msk.f32.vlgmr.msra.gmra.mrb[2].mxu0 %vm363_vm5, %v2324_v35 }
0x1b87   :  { %2664 = vmatpush3.bf16.msra.mxu0 %v2741_v17  ;;  %2667 = vmatprep.mubr.msk.bf16.mxu0 %vm2833_vm4, %v2830_v14 }
0x1b88   :  { %2665 = vmatprep.subr.bf16.mxu0 %v2830_v14 }
0x1b8b   :  { %2666 = vmatpush3.bf16.msra.mxu0 %v2742_v7 }
0x1b8c   :  { %2671 = vmatprep.subr.bf16.mxu0 %v2830_v14 }
0x1c59   :  { %v2080_v16 = vpop.f32.mrb[2].mxu0 }
0x1c5a   :  { %v2084_v36 = vpack.c.bf16 %v2080_v16, %v2080_v16  ;;  %v2662_v15 = vpop.f32.mrb[3].mxu0 }
0x1c5c   :  { %2668 = vmatmul.mubr.msk.bf16.vlgmr.msra.gmra.mrb[60].mxu0 %vm46_vm1, %v2084_v36 }
0x1c5d   :  { %2675 = vmatprep.mubr.msk.bf16.mxu0 %vm2833_vm4, %v2830_v14  ;;  %2672 = vmatpush3.bf16.msra.mxu0 %v2157_v38 }
0x1c5e   :  { %2673 = vmatprep.subr.bf16.mxu0 %v2830_v14  ;;  %v2330_v14 = vld [vmem:[%s3435_s2 + $0x33] ss:$0 sm:$0xff] }
0x1c61   :  { %2674 = vmatpush3.bf16.msra.mxu0 %v2159_v39 }
0x1d2f   :  { %v2143_v43 = vpop.f32.mrb[60].mxu0 }
0x1d30   :  { %v2144_v51 = vadd.f32 %v2326_v42, %v2143_v43  ;;  %v2669_v44 = vpop.f32.mrb[61].mxu0 }
0x1d31   :  { %v2146_v45 = vpop.f32.mrb[62].mxu0 }
0x1d32   :  { %2803 = vtanh.f32 %v2144_v51  ;;  %v2670_v41 = vpop.f32.mrb[63].mxu0 }
0x1d3c   :  { %v2804_v58 = vpop.eup %2803 }
0x1d3d   :  { %v2150_v23 = vpack.c.bf16 %v2804_v58, %v2804_v58 }
0x1d3f   :  { %2676 = vmatmul.mubr.msk.bf16.vlgmr.msra.gmra.mrb[64].mxu0 %vm46_vm1, %v2150_v23 }
0x1e12   :  { %v2199_v34 = vpop.f32.mrb[64].mxu0 }
0x1e13   :  { %v2200_v59 = vadd.f32 %v2330_v14, %v2199_v34  ;;  %v2677_v46 = vpop.f32.mrb[65].mxu0 }
0x1e14   :  { %v2202_v47 = vpop.f32.mrb[66].mxu0 }
0x1e15   :  { %v2678_v48 = vpop.f32.mrb[67].mxu0  ;;  %2206 = vst.msk [vmem:[#allocation2] sm:$0x3] %vm2205_vm12, %v2200_v59 }
0x1e16   :  { %2816 = shalt.err (!%p2813_p4)
}
0x1e17   :  { %s2817_s2 = scalar_lea.hbm %s3439_s6, 32 }
0x1e18   :  { %p2818_p5 = scmp.ne.s32.totalorder %s3439_s6, %s2817_s2  ;;  %p2821_p6 = scmp.lt.u32.totalorder %s2817_s2, %s3439_s6 }
0x1e1a   :  { %p2823_p7 = pnand %p2821_p6, %p2818_p5 }
0x1e1c   :  { %2826 = shalt.err (!%p2823_p7)
}
0x1e1d   :  { %2216 = dma.vmem_to_hbm [thread:$0]  %s2214_s15, 32, %s3439_s6, [#allocation3]  }
0x1e1e   :  { %2827 = dma.done.wait [#allocation3], 32  }
0x1e1f   :  { %2828 = vsyncadd [#allocation3], 4294967264 }
0x1e20   :  { %2220 = vsyncpa [#allocation3], 1 }

</bundles_post_ra>
